<compile_context>
chip_gen: v7x
topology: tpu7x:2x2x1
jax: 0.10.0
libtpu: 0.0.40
codegen_flags: <defaults>
</compile_context>

<pallas_src>
import functools

import jax
import jax.numpy as jnp
from jax import lax
from jax.experimental import pallas as pl
from jax.experimental.pallas import tpu as pltpu  # noqa: F401  (TPU backend)


# ------------------------------ fused kernel --------------------------------


def _fused_forward_kernel(x_ref, wg_ref, bg_ref, we_ref, be_ref,
                          wd_ref, bd_ref, wa_ref, ba_ref,
                          out_ref, enc_ref, rec_ref, *, batch, seq):
    # x:   (B*S, Dg)          weights: (Din, Dout)  (pre-transposed on host)
    # out: (B, Hg, Hs)        enc/rec: (B*S, H)
    x = x_ref[...]

    # graph_model: tanh(Linear(Dg -> H))      -- tanh goes to the EUP slot.
    ge = jnp.tanh(
        jnp.dot(x, wg_ref[...], preferred_element_type=jnp.float32) + bg_ref[...])
    # sequence_model: encoder tanh(Linear(H -> H)), decoder Linear(H -> H)
    se = jnp.tanh(
        jnp.dot(ge, we_ref[...], preferred_element_type=jnp.float32) + be_ref[...])
    rec = jnp.dot(se, wd_ref[...], preferred_element_type=jnp.float32) + bd_ref[...]

    enc_ref[...] = se
    rec_ref[...] = rec

    # TODO(synk): torch.isnan(...).any() guards raise a Python exception on
    # data values; there is no in-kernel equivalent, so they are omitted.

    # torch.mean(..., dim=0, keepdim=True) followed by F.normalize(p=2, dim=1):
    # mean over the batch axis, then L2 norm over the sequence axis (clamped
    # at 1e-12).  B is tiny -> static unroll of the batch sum; the axis=0
    # reductions go through the XLU (separate slot from the MXU/VPU work).
    inv_b = jnp.float32(1.0 / batch)

    def norm_mean(a2d):
        m = a2d[0:seq, :]
        for b in range(1, batch):                               # static unroll
            m = m + a2d[b * seq:(b + 1) * seq, :]
        m = m * inv_b                                           # (S, H)
        nrm = jnp.sqrt(jnp.sum(m * m, axis=0, keepdims=True))   # (1, H)
        return m * pl.reciprocal(jnp.maximum(nrm, 1e-12), approx=True)

    gm = norm_mean(ge)          # (S, Hg)
    em = norm_mean(se)          # (S, Hs)
    means = gm + em             # broadcast add requires S == Hg == Hs (as in torch)

    # attention logits for every row at once: (B*S, Hg) -- one MXU matmul.
    logits = jnp.dot(se, wa_ref[...], preferred_element_type=jnp.float32) + ba_ref[...]

    # per-batch softmax over the sequence dim + attended = attn^T @ seq.
    # Slices start at multiples of seq (>= 8 sublanes), so they stay aligned.
    for b in range(batch):                                      # static unroll
        lo = b * seq
        logits_b = logits[lo:lo + seq, :]                       # (S, Hg)
        se_b = se[lo:lo + seq, :]                               # (S, Hs)
        mx = jnp.max(logits_b, axis=0, keepdims=True)
        p = jnp.exp(logits_b - mx)
        attn = p * pl.reciprocal(jnp.sum(p, axis=0, keepdims=True), approx=True)
        # contract over the shared sequence axis: (S,Hg)^T @ (S,Hs) -> (Hg,Hs)
        attended = lax.dot_general(attn, se_b, (((0,), (0,)), ((), ())),
                                   preferred_element_type=jnp.float32)
        out_ref[b] = means + attended                           # full-lane store


# ------------------------------ full forward --------------------------------


def fusion_model_forward(graph_data, sequence_data, params):
    # sequence_data is accepted for interface fidelity but (as in the PyTorch
    # forward) never used beyond being moved to device.
    del sequence_data
    B, S, Dg = graph_data.shape
    H = params["Wg"].shape[0]
    Hg = params["Wa"].shape[0]
    Hs = H
    assert S == Hg == Hs, "PyTorch broadcast in FusionModel requires S == Hg == Hs"

    # Pre-transpose weights once on host to (Din, Dout): every in-kernel matmul
    # is then a plain (M,K)x(K,N) MXU feed.
    wgT = jnp.transpose(params["Wg"])
    weT = jnp.transpose(params["We"])
    wdT = jnp.transpose(params["Wd"])
    waT = jnp.transpose(params["Wa"])

    # Collapse batch into the sublane axis (host-side reshape is free).
    x2d = graph_data.reshape(B * S, Dg)

    flops = 2 * B * S * (Dg * H + 3 * H * H) + 2 * B * S * Hg * Hs
    transcendentals = 2 * B * S * H + B * S * Hg
    bytes_accessed = 4 * (B * S * Dg + Dg * H + 3 * H * H + 4 * H
                          + 2 * B * S * H + B * Hg * Hs)

    out, enc2d, rec2d = pl.pallas_call(
        functools.partial(_fused_forward_kernel, batch=B, seq=S),
        out_shape=(
            jax.ShapeDtypeStruct((B, Hg, Hs), jnp.float32),
            jax.ShapeDtypeStruct((B * S, H), jnp.float32),
            jax.ShapeDtypeStruct((B * S, H), jnp.float32),
        ),
        cost_estimate=pl.CostEstimate(
            flops=flops,
            transcendentals=transcendentals,
            bytes_accessed=bytes_accessed),
    )(x2d, wgT, params["bg"], weT, params["be"],
      wdT, params["bd"], waT, params["ba"])

    encoded = enc2d.reshape(B, S, H)
    recon = rec2d.reshape(B, S, H)
    return out, encoded, recon


# ------------------------------ pure-JAX reference ---------------------------


def reference_forward(graph_data, params):
    ge = jnp.tanh(jnp.einsum("bsd,hd->bsh", graph_data, params["Wg"]) + params["bg"][0])
    se = jnp.tanh(jnp.einsum("bsh,gh->bsg", ge, params["We"]) + params["be"][0])
    rec = jnp.einsum("bsh,gh->bsg", se, params["Wd"]) + params["bd"][0]

    def norm_mean(x):
        m = jnp.mean(x, axis=0, keepdims=True)                 # (1,S,H)
        n = jnp.sqrt(jnp.sum(m * m, axis=1, keepdims=True))    # (1,1,H)
        return m / jnp.maximum(n, 1e-12)

    gm = norm_mean(ge)
    em = norm_mean(se)
    logits = jnp.einsum("bsh,gh->bsg", se, params["Wa"]) + params["ba"][0]
    attn = jax.nn.softmax(logits, axis=1)
    attended = jnp.einsum("bsg,bsh->bgh", attn, se)
    out = gm + em + attended
    return out, se, rec


# ---------------------------------- main -------------------------------------


if __name__ == "__main__":
    # S == H required by the PyTorch broadcast; H = 128 keeps every store
    # lane-dense (full 128-lane vregs) while staying small.
    B, S, H, Dg = 2, 128, 128, 32
    key = jax.random.PRNGKey(0)
    ks = jax.random.split(key, 10)

    graph_data = jax.random.normal(ks[0], (B, S, Dg), jnp.float32)
    sequence_data = jax.random.normal(ks[9], (B, S, H), jnp.float32)  # unused, as in torch

    params = {
        # graph_model: Linear(Dg -> H) + tanh   (PyTorch (out,in) layout)
        "Wg": 0.1 * jax.random.normal(ks[1], (H, Dg), jnp.float32),
        "bg": 0.1 * jax.random.normal(ks[2], (1, H), jnp.float32),
        # sequence_model: encoder Linear(H -> H) + tanh, decoder Linear(H -> H)
        "We": 0.1 * jax.random.normal(ks[3], (H, H), jnp.float32),
        "be": 0.1 * jax.random.normal(ks[4], (1, H), jnp.float32),
        "Wd": 0.1 * jax.random.normal(ks[5], (H, H), jnp.float32),
        "bd": 0.1 * jax.random.normal(ks[6], (1, H), jnp.float32),
        # fusion attention: Linear(seq_hidden -> graph_hidden)
        "Wa": 0.1 * jax.random.normal(ks[7], (H, H), jnp.float32),
        "ba": 0.1 * jax.random.normal(ks[8], (1, H), jnp.float32),
    }

    output, encoded, recon = fusion_model_forward(graph_data, sequence_data, params)
    jax.block_until_ready((output, encoded, recon))

    ref_out, ref_enc, ref_rec = reference_forward(graph_data, params)
    assert jnp.allclose(output, ref_out, atol=2e-3, rtol=2e-3), "output mismatch"
    assert jnp.allclose(encoded, ref_enc, atol=2e-3, rtol=2e-3), "encoded mismatch"
    assert jnp.allclose(recon, ref_rec, atol=2e-3, rtol=2e-3), "reconstruction mismatch"

    print("KERNEL_OK")
</pallas_src>

<mosaic_0001>
module attributes {stable_mosaic.version = 11 : i64} {
  func.func @_fused_forward_kernel(%arg0: memref<256x32xf32, #tpu.memory_space<vmem>>, %arg1: memref<32x128xf32, #tpu.memory_space<vmem>>, %arg2: memref<1x128xf32, #tpu.memory_space<vmem>>, %arg3: memref<128x128xf32, #tpu.memory_space<vmem>>, %arg4: memref<1x128xf32, #tpu.memory_space<vmem>>, %arg5: memref<128x128xf32, #tpu.memory_space<vmem>>, %arg6: memref<1x128xf32, #tpu.memory_space<vmem>>, %arg7: memref<128x128xf32, #tpu.memory_space<vmem>>, %arg8: memref<1x128xf32, #tpu.memory_space<vmem>>, %arg9: memref<2x128x128xf32, #tpu.memory_space<vmem>>, %arg10: memref<256x128xf32, #tpu.memory_space<vmem>>, %arg11: memref<256x128xf32, #tpu.memory_space<vmem>>) attributes {dimension_semantics = [], scalar_prefetch = 0 : i64, scratch_operands = 0 : i64, tpu.core_type = #tpu.core_type<tc>} {
    %c0 = arith.constant 0 : index
    %c0_0 = arith.constant 0 : index
    %0 = vector.load %arg0[%c0, %c0_0] : memref<256x32xf32, #tpu.memory_space<vmem>>, vector<256x32xf32>
    %c0_1 = arith.constant 0 : index
    %c0_2 = arith.constant 0 : index
    %1 = vector.load %arg1[%c0_1, %c0_2] : memref<32x128xf32, #tpu.memory_space<vmem>>, vector<32x128xf32>
    %cst = arith.constant dense<0.000000e+00> : vector<256x128xf32>
    %2 = tpu.matmul %0, %1, %cst {dimension_numbers = #tpu.dot_dimension_numbers<[1], [0], [0], [1], [0, 0, 1, 1], [], []>} : vector<256x32xf32>, vector<32x128xf32>, vector<256x128xf32> -> vector<256x128xf32>
    %c0_3 = arith.constant 0 : index
    %c0_4 = arith.constant 0 : index
    %3 = vector.load %arg2[%c0_3, %c0_4] : memref<1x128xf32, #tpu.memory_space<vmem>>, vector<1x128xf32>
    %4 = vector.broadcast %3 : vector<1x128xf32> to vector<256x128xf32>
    %5 = arith.addf %2, %4 : vector<256x128xf32>
    %6 = math.tanh %5 : vector<256x128xf32>
    %c0_5 = arith.constant 0 : index
    %c0_6 = arith.constant 0 : index
    %7 = vector.load %arg3[%c0_5, %c0_6] : memref<128x128xf32, #tpu.memory_space<vmem>>, vector<128x128xf32>
    %cst_7 = arith.constant dense<0.000000e+00> : vector<256x128xf32>
    %8 = tpu.matmul %6, %7, %cst_7 {dimension_numbers = #tpu.dot_dimension_numbers<[1], [0], [0], [1], [0, 0, 1, 1], [], []>} : vector<256x128xf32>, vector<128x128xf32>, vector<256x128xf32> -> vector<256x128xf32>
    %c0_8 = arith.constant 0 : index
    %c0_9 = arith.constant 0 : index
    %9 = vector.load %arg4[%c0_8, %c0_9] : memref<1x128xf32, #tpu.memory_space<vmem>>, vector<1x128xf32>
    %10 = vector.broadcast %9 : vector<1x128xf32> to vector<256x128xf32>
    %11 = arith.addf %8, %10 : vector<256x128xf32>
    %12 = math.tanh %11 : vector<256x128xf32>
    %c0_10 = arith.constant 0 : index
    %c0_11 = arith.constant 0 : index
    %13 = vector.load %arg5[%c0_10, %c0_11] : memref<128x128xf32, #tpu.memory_space<vmem>>, vector<128x128xf32>
    %cst_12 = arith.constant dense<0.000000e+00> : vector<256x128xf32>
    %14 = tpu.matmul %12, %13, %cst_12 {dimension_numbers = #tpu.dot_dimension_numbers<[1], [0], [0], [1], [0, 0, 1, 1], [], []>} : vector<256x128xf32>, vector<128x128xf32>, vector<256x128xf32> -> vector<256x128xf32>
    %c0_13 = arith.constant 0 : index
    %c0_14 = arith.constant 0 : index
    %15 = vector.load %arg6[%c0_13, %c0_14] : memref<1x128xf32, #tpu.memory_space<vmem>>, vector<1x128xf32>
    %16 = vector.broadcast %15 : vector<1x128xf32> to vector<256x128xf32>
    %17 = arith.addf %14, %16 : vector<256x128xf32>
    %c0_15 = arith.constant 0 : index
    %c0_16 = arith.constant 0 : index
    %18 = vector.load %arg10[%c0_15, %c0_16] : memref<256x128xf32, #tpu.memory_space<vmem>>, vector<256x128xf32>
    tpu.vector_store %arg10[%c0_15, %c0_16], %12 {strides = array<i32>} : memref<256x128xf32, #tpu.memory_space<vmem>>, vector<256x128xf32>,
    %c0_17 = arith.constant 0 : index
    %c0_18 = arith.constant 0 : index
    %19 = vector.load %arg11[%c0_17, %c0_18] : memref<256x128xf32, #tpu.memory_space<vmem>>, vector<256x128xf32>
    tpu.vector_store %arg11[%c0_17, %c0_18], %17 {strides = array<i32>} : memref<256x128xf32, #tpu.memory_space<vmem>>, vector<256x128xf32>,
    %20 = vector.extract_strided_slice %6 {offsets = [0, 0], sizes = [128, 128], strides = [1, 1]} : vector<256x128xf32> to vector<128x128xf32>
    %21 = vector.extract_strided_slice %6 {offsets = [128, 0], sizes = [128, 128], strides = [1, 1]} : vector<256x128xf32> to vector<128x128xf32>
    %22 = arith.addf %20, %21 : vector<128x128xf32>
    %cst_19 = arith.constant 5.000000e-01 : f32
    %23 = vector.broadcast %cst_19 : f32 to vector<128x128xf32>
    %24 = arith.mulf %22, %23 : vector<128x128xf32>
    %25 = arith.mulf %24, %24 : vector<128x128xf32>
    %cst_20 = arith.constant dense<0.000000e+00> : vector<128xf32>
    %26 = vector.multi_reduction <add>, %25, %cst_20 [0] : vector<128x128xf32> to vector<128xf32>
    %27 = vector.shape_cast %26 : vector<128xf32> to vector<1x128xf32>
    %28 = math.sqrt %27 : vector<1x128xf32>
    %cst_21 = arith.constant 9.99999996E-13 : f32
    %29 = vector.broadcast %cst_21 : f32 to vector<1x128xf32>
    %30 = arith.maximumf %28, %29 : vector<1x128xf32>
    %31 = tpu.reciprocal %30 {approx = true} : vector<1x128xf32> -> vector<1x128xf32>
    %32 = vector.broadcast %31 : vector<1x128xf32> to vector<128x128xf32>
    %33 = arith.mulf %24, %32 : vector<128x128xf32>
    %34 = vector.extract_strided_slice %12 {offsets = [0, 0], sizes = [128, 128], strides = [1, 1]} : vector<256x128xf32> to vector<128x128xf32>
    %35 = vector.extract_strided_slice %12 {offsets = [128, 0], sizes = [128, 128], strides = [1, 1]} : vector<256x128xf32> to vector<128x128xf32>
    %36 = arith.addf %34, %35 : vector<128x128xf32>
    %cst_22 = arith.constant 5.000000e-01 : f32
    %37 = vector.broadcast %cst_22 : f32 to vector<128x128xf32>
    %38 = arith.mulf %36, %37 : vector<128x128xf32>
    %39 = arith.mulf %38, %38 : vector<128x128xf32>
    %cst_23 = arith.constant dense<0.000000e+00> : vector<128xf32>
    %40 = vector.multi_reduction <add>, %39, %cst_23 [0] : vector<128x128xf32> to vector<128xf32>
    %41 = vector.shape_cast %40 : vector<128xf32> to vector<1x128xf32>
    %42 = math.sqrt %41 : vector<1x128xf32>
    %cst_24 = arith.constant 9.99999996E-13 : f32
    %43 = vector.broadcast %cst_24 : f32 to vector<1x128xf32>
    %44 = arith.maximumf %42, %43 : vector<1x128xf32>
    %45 = tpu.reciprocal %44 {approx = true} : vector<1x128xf32> -> vector<1x128xf32>
    %46 = vector.broadcast %45 : vector<1x128xf32> to vector<128x128xf32>
    %47 = arith.mulf %38, %46 : vector<128x128xf32>
    %48 = arith.addf %33, %47 : vector<128x128xf32>
    %c0_25 = arith.constant 0 : index
    %c0_26 = arith.constant 0 : index
    %49 = vector.load %arg7[%c0_25, %c0_26] : memref<128x128xf32, #tpu.memory_space<vmem>>, vector<128x128xf32>
    %cst_27 = arith.constant dense<0.000000e+00> : vector<256x128xf32>
    %50 = tpu.matmul %12, %49, %cst_27 {dimension_numbers = #tpu.dot_dimension_numbers<[1], [0], [0], [1], [0, 0, 1, 1], [], []>} : vector<256x128xf32>, vector<128x128xf32>, vector<256x128xf32> -> vector<256x128xf32>
    %c0_28 = arith.constant 0 : index
    %c0_29 = arith.constant 0 : index
    %51 = vector.load %arg8[%c0_28, %c0_29] : memref<1x128xf32, #tpu.memory_space<vmem>>, vector<1x128xf32>
    %52 = vector.broadcast %51 : vector<1x128xf32> to vector<256x128xf32>
    %53 = arith.addf %50, %52 : vector<256x128xf32>
    %54 = vector.extract_strided_slice %53 {offsets = [0, 0], sizes = [128, 128], strides = [1, 1]} : vector<256x128xf32> to vector<128x128xf32>
    %55 = vector.extract_strided_slice %12 {offsets = [0, 0], sizes = [128, 128], strides = [1, 1]} : vector<256x128xf32> to vector<128x128xf32>
    %cst_30 = arith.constant dense<0xFF800000> : vector<128xf32>
    %56 = vector.multi_reduction <maximumf>, %54, %cst_30 [0] : vector<128x128xf32> to vector<128xf32>
    %57 = vector.shape_cast %56 : vector<128xf32> to vector<1x128xf32>
    %58 = vector.broadcast %57 : vector<1x128xf32> to vector<128x128xf32>
    %59 = arith.subf %54, %58 : vector<128x128xf32>
    %60 = math.exp %59 : vector<128x128xf32>
    %cst_31 = arith.constant dense<0.000000e+00> : vector<128xf32>
    %61 = vector.multi_reduction <add>, %60, %cst_31 [0] : vector<128x128xf32> to vector<128xf32>
    %62 = vector.shape_cast %61 : vector<128xf32> to vector<1x128xf32>
    %63 = tpu.reciprocal %62 {approx = true} : vector<1x128xf32> -> vector<1x128xf32>
    %64 = vector.broadcast %63 : vector<1x128xf32> to vector<128x128xf32>
    %65 = arith.mulf %60, %64 : vector<128x128xf32>
    %cst_32 = arith.constant dense<0.000000e+00> : vector<128x128xf32>
    %66 = tpu.matmul %65, %55, %cst_32 {dimension_numbers = #tpu.dot_dimension_numbers<[0], [0], [1], [1], [0, 1, 1, 1], [], []>} : vector<128x128xf32>, vector<128x128xf32>, vector<128x128xf32> -> vector<128x128xf32>
    %67 = arith.addf %48, %66 : vector<128x128xf32>
    %c0_33 = arith.constant 0 : index
    %c0_34 = arith.constant 0 : index
    %c0_35 = arith.constant 0 : index
    %68 = vector.load %arg9[%c0_33, %c0_34, %c0_35] : memref<2x128x128xf32, #tpu.memory_space<vmem>>, vector<1x128x128xf32>
    %69 = vector.shape_cast %68 : vector<1x128x128xf32> to vector<128x128xf32>
    %70 = vector.shape_cast %67 : vector<128x128xf32> to vector<1x128x128xf32>
    tpu.vector_store %arg9[%c0_33, %c0_34, %c0_35], %70 {strides = array<i32>} : memref<2x128x128xf32, #tpu.memory_space<vmem>>, vector<1x128x128xf32>,
    %71 = vector.extract_strided_slice %53 {offsets = [128, 0], sizes = [128, 128], strides = [1, 1]} : vector<256x128xf32> to vector<128x128xf32>
    %72 = vector.extract_strided_slice %12 {offsets = [128, 0], sizes = [128, 128], strides = [1, 1]} : vector<256x128xf32> to vector<128x128xf32>
    %cst_36 = arith.constant dense<0xFF800000> : vector<128xf32>
    %73 = vector.multi_reduction <maximumf>, %71, %cst_36 [0] : vector<128x128xf32> to vector<128xf32>
    %74 = vector.shape_cast %73 : vector<128xf32> to vector<1x128xf32>
    %75 = vector.broadcast %74 : vector<1x128xf32> to vector<128x128xf32>
    %76 = arith.subf %71, %75 : vector<128x128xf32>
    %77 = math.exp %76 : vector<128x128xf32>
    %cst_37 = arith.constant dense<0.000000e+00> : vector<128xf32>
    %78 = vector.multi_reduction <add>, %77, %cst_37 [0] : vector<128x128xf32> to vector<128xf32>
    %79 = vector.shape_cast %78 : vector<128xf32> to vector<1x128xf32>
    %80 = tpu.reciprocal %79 {approx = true} : vector<1x128xf32> -> vector<1x128xf32>
    %81 = vector.broadcast %80 : vector<1x128xf32> to vector<128x128xf32>
    %82 = arith.mulf %77, %81 : vector<128x128xf32>
    %cst_38 = arith.constant dense<0.000000e+00> : vector<128x128xf32>
    %83 = tpu.matmul %82, %72, %cst_38 {dimension_numbers = #tpu.dot_dimension_numbers<[0], [0], [1], [1], [0, 1, 1, 1], [], []>} : vector<128x128xf32>, vector<128x128xf32>, vector<128x128xf32> -> vector<128x128xf32>
    %84 = arith.addf %48, %83 : vector<128x128xf32>
    %c1 = arith.constant 1 : index
    %c0_39 = arith.constant 0 : index
    %c0_40 = arith.constant 0 : index
    %85 = vector.load %arg9[%c1, %c0_39, %c0_40] : memref<2x128x128xf32, #tpu.memory_space<vmem>>, vector<1x128x128xf32>
    %86 = vector.shape_cast %85 : vector<1x128x128xf32> to vector<128x128xf32>
    %87 = vector.shape_cast %84 : vector<128x128xf32> to vector<1x128x128xf32>
    tpu.vector_store %arg9[%c1, %c0_39, %c0_40], %87 {strides = array<i32>} : memref<2x128x128xf32, #tpu.memory_space<vmem>>, vector<1x128x128xf32>,
    return
  }
}

</mosaic_0001>

<bundles_post_ra>
// kernel: tpu_custom_call.1
= control target key start
LH: loop header
LB: loop body
LE: loop exit
PB: predicated region body
PF: predicated region fallthrough
CT: control target
= control target key end

     0   :  { %17 = vsyncpa [#allocation3], 0  ;;  %s4744_s0 = inlined_call_operand.vmem [shape: f32[256,32], index: 0, kind: input, shape index: {}]   ;;  %s4745_s1 = inlined_call_operand.vmem [shape: f32[32,128], index: 1, kind: input, shape index: {}]   ;;  %s4746_s2 = inlined_call_operand.vmem [shape: f32[1,128], index: 2, kind: input, shape index: {}]   ;;  %s4747_s3 = inlined_call_operand.vmem [shape: f32[128,128], index: 3, kind: input, shape index: {}]   ;;  %s4748_s4 = inlined_call_operand.vmem [shape: f32[1,128], index: 4, kind: input, shape index: {}]   ;;  %s4749_s5 = inlined_call_operand.vmem [shape: f32[128,128], index: 5, kind: input, shape index: {}]   ;;  %s4750_s6 = inlined_call_operand.vmem [shape: f32[1,128], index: 6, kind: input, shape index: {}]   ;;  %s4751_s7 = inlined_call_operand.hbm [shape: f32[128,128], index: 7, kind: input, shape index: {}]   ;;  %s4752_s8 = inlined_call_operand.vmem [shape: f32[1,128], index: 8, kind: input, shape index: {}]   ;;  %s4753_s9 = inlined_call_operand.hbm [shape: f32[2,128,128], index: 9, kind: output, shape index: {0}]   ;;  %s4754_s10 = inlined_call_operand.hbm [shape: f32[256,128], index: 10, kind: output, shape index: {1}]   ;;  %s4755_s11 = inlined_call_operand.hbm [shape: f32[256,128], index: 11, kind: output, shape index: {2}]  }
   0x1   :  { %18 = vsyncpa [#allocation4], 0 }
   0x2   :  { %19 = vsyncpa [#allocation7], 0  ;;  %s3461_s17 = smov [#allocation2]   ;;  %s3367_s21 = scalar_lea.hbm %s4751_s7, 2048 }
   0x3   :  { %s39_s18 = sshll.u32 %s3461_s17, 4  ;;  %p3368_p0 = scmp.ne.s32.totalorder %s4751_s7, %s3367_s21  ;;  %s40_s18 = int_to_ptr.vmem [resolvable:$true] %s39_s18 }
   0x4   :  { %p3371_p1 = scmp.lt.u32.totalorder %s3367_s21, %s4751_s7 }
   0x6   :  { %p3373_p2 = pnand %p3371_p1, %p3368_p0 }
   0x8   :  { %3376 = shalt.err (!%p3373_p2)
}
   0x9   :  { %s3377_s26 = scalar_lea.vmem %s40_s18, 2048  ;;  %p3382_p4 = scmp.lt.s32.totalorder %s40_s18, %s40_s18 }
   0xa   :  { %p3378_p3 = scmp.ne.s32.totalorder %s40_s18, %s3377_s26  ;;  %p3383_p5 = scmp.lt.s32.totalorder %s3377_s26, %s3377_s26 }
   0xc   :  { %p3384_p6 = por %p3383_p5, %p3382_p4 }
   0xe   :  { %p3385_p7 = pnand %p3384_p6, %p3378_p3 }
  0x10   :  { %3388 = shalt.err (!%p3385_p7)
}
  0x11   :  { %s3462_s27 = smov 128   ;;  %s3463_s28 = smov 8  }
  0x12   :  { %45 = dma.hbm_to_vmem [thread:$0]  %s4751_s7, 2048, %s40_s18, [#allocation3], %s3462_s27, %s3462_s27, %s3463_s28  }
  0x13   :  { %3455 = dma.done.wait [#allocation3], 2048  }
  0x14   :  { %3456 = vsyncadd [#allocation3], 4294965248  ;;  %vm94_vm0 = vcmask 261120   ;;  %v83_v0 = vld [vmem:[%s4745_s1] sm:$0xff]  ;;  %v84_v1 = vld [vmem:[%s4745_s1 + $0x8] sm:$0xff] }
  0x15   :  { %v85_v2 = vld [vmem:[%s4745_s1 + $0x10] sm:$0xff]  ;;  %v2861_v3 = vpack.c.bf16 %v84_v1, %v83_v0  ;;  %v86_v4 = vld [vmem:[%s4745_s1 + $0x18] sm:$0xff]  ;;  %v51_v5 = vld [vmem:[%s4744_s0] sm:$0xff] }
  0x16   :  { %v2865_v6 = vpack.c.bf16 %v86_v4, %v85_v2  ;;  %2461 = vmatprep.mubr.msk.f32.mxu0 %vm94_vm0, %v51_v5  ;;  %v52_v7 = vld [vmem:[%s4744_s0 + $0x8] sm:$0xff]  ;;  %v53_v8 = vld [vmem:[%s4744_s0 + $0x10] sm:$0xff]  ;;  %v54_v9 = vld [vmem:[%s4744_s0 + $0x18] sm:$0xff] }
  0x17   :  { %2862 = vmatprep.subr.bf16.mxu0 %v2861_v3  ;;  %v448_v10 = vld [vmem:[%s4747_s3] sm:$0xff]  ;;  %v449_v11 = vld [vmem:[%s4747_s3 + $0x8] sm:$0xff]  ;;  %v450_v12 = vld [vmem:[%s4747_s3 + $0x10] sm:$0xff] }
  0x18   :  { %2864 = vmatpush3.bf16.msra.mxu0 %v2861_v3  ;;  %v55_v13 = vld [vmem:[%s4744_s0 + $0x20] sm:$0xff]  ;;  %v2869_v14 = vpack.c.bf16 %v449_v11, %v448_v10  ;;  %v451_v15 = vld [vmem:[%s4747_s3 + $0x18] sm:$0xff]  ;;  %v453_v18 = vld [vmem:[%s4747_s3 + $0x28] sm:$0xff] }
  0x19   :  { %2866 = vmatprep.subr.bf16.mxu0 %v2865_v6  ;;  %v2873_v16 = vpack.c.bf16 %v451_v15, %v450_v12  ;;  %v452_v17 = vld [vmem:[%s4747_s3 + $0x20] sm:$0xff]  ;;  %v56_v19 = vld [vmem:[%s4744_s0 + $0x28] sm:$0xff]  ;;  %v57_v20 = vld [vmem:[%s4744_s0 + $0x30] sm:$0xff] }
  0x1a   :  { %2870 = vmatprep.subr.bf16.mxu1 %v2869_v14  ;;  %v2877_v21 = vpack.c.bf16 %v453_v18, %v452_v17  ;;  %v454_v22 = vld [vmem:[%s4747_s3 + $0x30] sm:$0xff]  ;;  %v455_v23 = vld [vmem:[%s4747_s3 + $0x38] sm:$0xff]  ;;  %v59_v25 = vld [vmem:[%s4744_s0 + $0x40] sm:$0xff] }
  0x1b   :  { %2872 = vmatpush3.bf16.msra.mxu1 %v2869_v14  ;;  %v58_v24 = vld [vmem:[%s4744_s0 + $0x38] sm:$0xff]  ;;  %v2881_v26 = vpack.c.bf16 %v455_v23, %v454_v22  ;;  %v60_v27 = vld [vmem:[%s4744_s0 + $0x48] sm:$0xff]  ;;  %v61_v28 = vld [vmem:[%s4744_s0 + $0x50] sm:$0xff] }
  0x1c   :  { %2868 = vmatpush3.bf16.msra.mxu0 %v2865_v6  ;;  %2874 = vmatprep.subr.bf16.mxu1 %v2873_v16  ;;  %v62_v29 = vld [vmem:[%s4744_s0 + $0x58] sm:$0xff]  ;;  %v63_v30 = vld [vmem:[%s4744_s0 + $0x60] sm:$0xff]  ;;  %v64_v31 = vld [vmem:[%s4744_s0 + $0x68] sm:$0xff] }
  0x1d   :  { %v65_v32 = vld [vmem:[%s4744_s0 + $0x70] sm:$0xff]  ;;  %v66_v33 = vld [vmem:[%s4744_s0 + $0x78] sm:$0xff]  ;;  %v67_v34 = vld [vmem:[%s4744_s0 + $0x80] sm:$0xff] }
  0x1e   :  { %v68_v35 = vld [vmem:[%s4744_s0 + $0x88] sm:$0xff]  ;;  %v69_v36 = vld [vmem:[%s4744_s0 + $0x90] sm:$0xff]  ;;  %v70_v37 = vld [vmem:[%s4744_s0 + $0x98] sm:$0xff] }
  0x1f   :  { %2462 = vmatmul.mubr.msk.f32.vlgmr.msra.gmra.mrb[0].mxu0 %vm94_vm0, %v52_v7  ;;  %2876 = vmatpush3.bf16.msra.mxu1 %v2873_v16  ;;  %v71_v38 = vld [vmem:[%s4744_s0 + $0xa0] sm:$0xff]  ;;  %v72_v39 = vld [vmem:[%s4744_s0 + $0xa8] sm:$0xff]  ;;  %v73_v40 = vld [vmem:[%s4744_s0 + $0xb0] sm:$0xff] }
  0x20   :  { %2464 = vmatprep.mubr.msk.f32.mxu0 %vm94_vm0, %v53_v8  ;;  %2878 = vmatprep.subr.bf16.mxu1 %v2877_v21  ;;  %v74_v41 = vld [vmem:[%s4744_s0 + $0xb8] sm:$0xff]  ;;  %v75_v42 = vld [vmem:[%s4744_s0 + $0xc0] sm:$0xff]  ;;  %v76_v43 = vld [vmem:[%s4744_s0 + $0xc8] sm:$0xff] }
  0x21   :  { %v77_v44 = vld [vmem:[%s4744_s0 + $0xd0] sm:$0xff]  ;;  %v78_v45 = vld [vmem:[%s4744_s0 + $0xd8] sm:$0xff]  ;;  %v79_v46 = vld [vmem:[%s4744_s0 + $0xe0] sm:$0xff] }
  0x22   :  { %v80_v47 = vld [vmem:[%s4744_s0 + $0xe8] sm:$0xff]  ;;  %v81_v48 = vld [vmem:[%s4744_s0 + $0xf0] sm:$0xff]  ;;  %v82_v49 = vld [vmem:[%s4744_s0 + $0xf8] sm:$0xff] }
  0x23   :  { %2465 = vmatmul.mubr.msk.f32.gmra.mrb[2].mxu0 %vm94_vm0, %v54_v9  ;;  %2880 = vmatpush3.bf16.msra.mxu1 %v2877_v21  ;;  %v456_v50 = vld [vmem:[%s4747_s3 + $0x40] sm:$0xff]  ;;  %v457_v51 = vld [vmem:[%s4747_s3 + $0x48] sm:$0xff]  ;;  %v458_v53 = vld [vmem:[%s4747_s3 + $0x50] sm:$0xff] }
  0x24   :  { %2467 = vmatprep.mubr.msk.f32.mxu0 %vm94_vm0, %v55_v13  ;;  %2882 = vmatprep.subr.bf16.mxu1 %v2881_v26  ;;  %v2885_v52 = vpack.c.bf16 %v457_v51, %v456_v50  ;;  %v459_v54 = vld [vmem:[%s4747_s3 + $0x58] sm:$0xff]  ;;  %v460_v56 = vld [vmem:[%s4747_s3 + $0x60] sm:$0xff]  ;;  %v461_v57 = vld [vmem:[%s4747_s3 + $0x68] sm:$0xff] }
  0x25   :  { %v2889_v55 = vpack.c.bf16 %v459_v54, %v458_v53  ;;  %v2893_v58 = vpack.c.bf16 %v461_v57, %v460_v56  ;;  %v462_v59 = vld [vmem:[%s4747_s3 + $0x70] sm:$0xff]  ;;  %v463_v60 = vld [vmem:[%s4747_s3 + $0x78] sm:$0xff]  ;;  %v1244_v62 = vld [vmem:[#allocation2] sm:$0xff] }
  0x26   :  { %v2897_v61 = vpack.c.bf16 %v463_v60, %v462_v59  ;;  %v1245_v63 = vld [vmem:[#allocation2 + $0x8] sm:$0xff]  ;;  %v728_v1 = vld [vmem:[%s4749_s5] sm:$0xff]  ;;  %v730_v4 = vld [vmem:[%s4749_s5 + $0x10] sm:$0xff] }
  0x27   :  { %2468 = vmatmul.mubr.msk.f32.gmra.mrb[4].mxu0 %vm94_vm0, %v56_v19  ;;  %2884 = vmatpush3.bf16.msra.mxu1 %v2881_v26  ;;  %v2933_v0 = vpack.c.bf16 %v1245_v63, %v1244_v62  ;;  %v729_v2 = vld [vmem:[%s4749_s5 + $0x8] sm:$0xff]  ;;  %v731_v5 = vld [vmem:[%s4749_s5 + $0x18] sm:$0xff]  ;;  %v732_v7 = vld [vmem:[%s4749_s5 + $0x20] sm:$0xff] }
  0x28   :  { %2470 = vmatprep.mubr.msk.f32.mxu0 %vm94_vm0, %v57_v20  ;;  %2886 = vmatprep.subr.bf16.mxu1 %v2885_v52  ;;  %v2901_v3 = vpack.c.bf16 %v729_v2, %v728_v1  ;;  %v2905_v6 = vpack.c.bf16 %v731_v5, %v730_v4  ;;  %v733_v8 = vld [vmem:[%s4749_s5 + $0x28] sm:$0xff]  ;;  %v734_v10 = vld [vmem:[%s4749_s5 + $0x30] sm:$0xff]  ;;  %v735_v11 = vld [vmem:[%s4749_s5 + $0x38] sm:$0xff] }
  0x29   :  { %v2909_v9 = vpack.c.bf16 %v733_v8, %v732_v7  ;;  %v3757_v12 = vld [vmem:[%s4746_s2] ss:$0 sm:$0xff]  ;;  %v2913_v13 = vpack.c.bf16 %v735_v11, %v734_v10  ;;  %v1246_v26 = vld [vmem:[#allocation2 + $0x10] sm:$0xff]  ;;  %v1253_v54 = vld [vmem:[#allocation2 + $0x48] sm:$0xff] }
  0x2a   :  { %2902 = vmatprep.subr.bf16.mxu0 %v2901_v3  ;;  %v1252_v53 = vld [vmem:[#allocation2 + $0x40] sm:$0xff]  ;;  %v1254_v62 = vld [vmem:[#allocation2 + $0x50] sm:$0xff]  ;;  %v1255_v63 = vld [vmem:[#allocation2 + $0x58] sm:$0xff] }
  0x2b   :  { %2471 = vmatmul.mubr.msk.f32.gmra.mrb[6].mxu0 %vm94_vm0, %v58_v24  ;;  %2888 = vmatpush3.bf16.msra.mxu1 %v2885_v52  ;;  %v2949_v60 = vpack.c.bf16 %v1253_v54, %v1252_v53  ;;  %v2953_v5 = vpack.c.bf16 %v1255_v63, %v1254_v62  ;;  %v1256_v7 = vld [vmem:[#allocation2 + $0x60] sm:$0xff]  ;;  %v1257_v8 = vld [vmem:[#allocation2 + $0x68] sm:$0xff] }
  0x2c   :  { %2473 = vmatprep.mubr.msk.f32.mxu0 %vm94_vm0, %v59_v25  ;;  %2890 = vmatprep.subr.bf16.mxu1 %v2889_v55 }
  0x2d   :  { %2904 = vmatpush3.bf16.msra.mxu0 %v2901_v3 }
  0x2e   :  { %2906 = vmatprep.subr.bf16.mxu0 %v2905_v6 }
  0x2f   :  { %2474 = vmatmul.mubr.msk.f32.gmra.mrb[8].mxu0 %vm94_vm0, %v60_v27  ;;  %2892 = vmatpush3.bf16.msra.mxu1 %v2889_v55  ;;  %v1247_v27 = vld [vmem:[#allocation2 + $0x18] sm:$0xff] }
  0x30   :  { %2476 = vmatprep.mubr.msk.f32.mxu0 %vm94_vm0, %v61_v28  ;;  %2894 = vmatprep.subr.bf16.mxu1 %v2893_v58 }
  0x31   :  { %2908 = vmatpush3.bf16.msra.mxu0 %v2905_v6 }
  0x32   :  { %2910 = vmatprep.subr.bf16.mxu0 %v2909_v9 }
  0x33   :  { %2477 = vmatmul.mubr.msk.f32.gmra.mrb[10].mxu0 %vm94_vm0, %v62_v29  ;;  %2896 = vmatpush3.bf16.msra.mxu1 %v2893_v58 }
  0x34   :  { %2479 = vmatprep.mubr.msk.f32.mxu0 %vm94_vm0, %v63_v30  ;;  %2898 = vmatprep.subr.bf16.mxu1 %v2897_v61 }
  0x35   :  { %2912 = vmatpush3.bf16.msra.mxu0 %v2909_v9 }
  0x36   :  { %2914 = vmatprep.subr.bf16.mxu0 %v2913_v13 }
  0x37   :  { %2480 = vmatmul.mubr.msk.f32.gmra.mrb[12].mxu0 %vm94_vm0, %v64_v31  ;;  %2900 = vmatpush3.bf16.msra.mxu1 %v2897_v61 }
  0x38   :  { %2482 = vmatprep.mubr.msk.f32.mxu0 %vm94_vm0, %v65_v32  ;;  %2934 = vmatprep.subr.bf16.mxu1 %v2933_v0 }
  0x39   :  { %2916 = vmatpush3.bf16.msra.mxu0 %v2913_v13 }
  0x3b   :  { %2483 = vmatmul.mubr.msk.f32.gmra.mrb[14].mxu0 %vm94_vm0, %v66_v33  ;;  %v2937_v33 = vpack.c.bf16 %v1247_v27, %v1246_v26 }
  0x3c   :  { %2485 = vmatprep.mubr.msk.f32.mxu0 %vm94_vm0, %v67_v34 }
  0x3f   :  { %2486 = vmatmul.mubr.msk.f32.gmra.mrb[16].mxu0 %vm94_vm0, %v68_v35  ;;  %v1248_v35 = vld [vmem:[#allocation2 + $0x20] sm:$0xff] }
  0x40   :  { %2488 = vmatprep.mubr.msk.f32.mxu0 %vm94_vm0, %v69_v36  ;;  %v1249_v36 = vld [vmem:[#allocation2 + $0x28] sm:$0xff] }
  0x43   :  { %2489 = vmatmul.mubr.msk.f32.gmra.mrb[18].mxu0 %vm94_vm0, %v70_v37 }
  0x44   :  { %2491 = vmatprep.mubr.msk.f32.mxu0 %vm94_vm0, %v71_v38 }
  0x47   :  { %2492 = vmatmul.mubr.msk.f32.gmra.mrb[20].mxu0 %vm94_vm0, %v72_v39 }
  0x48   :  { %2494 = vmatprep.mubr.msk.f32.mxu0 %vm94_vm0, %v73_v40 }
  0x4b   :  { %2495 = vmatmul.mubr.msk.f32.gmra.mrb[22].mxu0 %vm94_vm0, %v74_v41 }
  0x4c   :  { %2497 = vmatprep.mubr.msk.f32.mxu0 %vm94_vm0, %v75_v42  ;;  %v2941_v42 = vpack.c.bf16 %v1249_v36, %v1248_v35 }
  0x4f   :  { %2498 = vmatmul.mubr.msk.f32.gmra.mrb[24].mxu0 %vm94_vm0, %v76_v43 }
  0x50   :  { %2500 = vmatprep.mubr.msk.f32.mxu0 %vm94_vm0, %v77_v44  ;;  %v1250_v44 = vld [vmem:[#allocation2 + $0x30] sm:$0xff] }
  0x53   :  { %2501 = vmatmul.mubr.msk.f32.gmra.mrb[26].mxu0 %vm94_vm0, %v78_v45  ;;  %v1251_v45 = vld [vmem:[#allocation2 + $0x38] sm:$0xff] }
  0x54   :  { %2503 = vmatprep.mubr.msk.f32.mxu0 %vm94_vm0, %v79_v46  ;;  %v2945_v51 = vpack.c.bf16 %v1251_v45, %v1250_v44 }
  0x57   :  { %2504 = vmatmul.mubr.msk.f32.gmra.mrb[28].mxu0 %vm94_vm0, %v80_v47 }
  0x58   :  { %2506 = vmatprep.mubr.msk.f32.mxu0 %vm94_vm0, %v81_v48 }
  0x5b   :  { %2507 = vmatmul.mubr.msk.f32.gmra.mrb[30].mxu0 %vm94_vm0, %v82_v49 }
  0xf2   :  { %v2463_v14 = vpop.f32.mrb[0].mxu0 }
  0xf3   :  { %v263_v15 = vadd.f32 %v2463_v14, %v3757_v12  ;;  %v257_v16 = vpop.f32.mrb[1].mxu0 }
  0xf4   :  { %v258_v17 = vadd.f32 %v3757_v12, %v257_v16 }
  0xf6   :  { %3163 = vtanh.f32 %v258_v17  ;;  %v2466_v18 = vpop.f32.mrb[2].mxu0 }
  0xf7   :  { %3165 = vtanh.f32 %v263_v15  ;;  %v273_v19 = vadd.f32 %v2466_v18, %v3757_v12  ;;  %v267_v20 = vpop.f32.mrb[3].mxu0  ;;  %v2957_v15 = vpack.c.bf16 %v1257_v8, %v1256_v7 }
  0xf8   :  { %v268_v21 = vadd.f32 %v3757_v12, %v267_v20 }
  0xfa   :  { %3167 = vtanh.f32 %v268_v21  ;;  %v2469_v22 = vpop.f32.mrb[4].mxu0 }
  0xfb   :  { %3169 = vtanh.f32 %v273_v19  ;;  %v283_v23 = vadd.f32 %v2469_v22, %v3757_v12  ;;  %v277_v24 = vpop.f32.mrb[5].mxu0 }
  0xfc   :  { %v278_v25 = vadd.f32 %v3757_v12, %v277_v24 }
  0xfe   :  { %3171 = vtanh.f32 %v278_v25  ;;  %v2472_v28 = vpop.f32.mrb[6].mxu0 }
  0xff   :  { %3173 = vtanh.f32 %v283_v23  ;;  %v293_v29 = vadd.f32 %v2472_v28, %v3757_v12  ;;  %v287_v30 = vpop.f32.mrb[7].mxu0 }
 0x100   :  { %v3766_v31 = vpop.eup %3163  ;;  %v288_v32 = vadd.f32 %v3757_v12, %v287_v30 }
 0x101   :  { %v3769_v34 = vpop.eup %3165  ;;  %2541 = vmatprep.mubr.f32.mxu1 %v3766_v31 }
 0x102   :  { %3175 = vtanh.f32 %v288_v32  ;;  %v2475_v37 = vpop.f32.mrb[8].mxu0  ;;  %2542 = vmatmul.mubr.f32.vlgmr.msra.gmra.mrb[0].mxu1 %v3769_v34 }
 0x103   :  { %3177 = vtanh.f32 %v293_v29  ;;  %v303_v38 = vadd.f32 %v2475_v37, %v3757_v12  ;;  %v297_v39 = vpop.f32.mrb[9].mxu0  ;;  %2936 = vmatpush3.bf16.msra.mxu1 %v2933_v0 }
 0x104   :  { %v3774_v40 = vpop.eup %3167  ;;  %v298_v41 = vadd.f32 %v3757_v12, %v297_v39  ;;  %2938 = vmatprep.subr.bf16.mxu1 %v2937_v33 }
 0x105   :  { %v3777_v43 = vpop.eup %3169  ;;  %2544 = vmatprep.mubr.f32.mxu1 %v3774_v40 }
 0x106   :  { %3179 = vtanh.f32 %v298_v41  ;;  %v2478_v46 = vpop.f32.mrb[10].mxu0  ;;  %2545 = vmatmul.mubr.f32.gmra.mrb[2].mxu1 %v3777_v43 }
 0x107   :  { %3181 = vtanh.f32 %v303_v38  ;;  %v313_v47 = vadd.f32 %v2478_v46, %v3757_v12  ;;  %v307_v48 = vpop.f32.mrb[11].mxu0  ;;  %2940 = vmatpush3.bf16.msra.mxu1 %v2937_v33 }
 0x108   :  { %v3782_v49 = vpop.eup %3171  ;;  %v308_v50 = vadd.f32 %v3757_v12, %v307_v48  ;;  %2942 = vmatprep.subr.bf16.mxu1 %v2941_v42 }
 0x109   :  { %v3785_v52 = vpop.eup %3173  ;;  %2547 = vmatprep.mubr.f32.mxu1 %v3782_v49 }
 0x10a   :  { %3183 = vtanh.f32 %v308_v50  ;;  %v2481_v55 = vpop.f32.mrb[12].mxu0  ;;  %2548 = vmatmul.mubr.f32.gmra.mrb[4].mxu1 %v3785_v52 }
 0x10b   :  { %3185 = vtanh.f32 %v313_v47  ;;  %v323_v56 = vadd.f32 %v2481_v55, %v3757_v12  ;;  %v317_v57 = vpop.f32.mrb[13].mxu0  ;;  %2944 = vmatpush3.bf16.msra.mxu1 %v2941_v42 }
 0x10c   :  { %v3790_v58 = vpop.eup %3175  ;;  %v318_v59 = vadd.f32 %v3757_v12, %v317_v57  ;;  %2946 = vmatprep.subr.bf16.mxu1 %v2945_v51 }
 0x10d   :  { %v3793_v61 = vpop.eup %3177  ;;  %2550 = vmatprep.mubr.f32.mxu1 %v3790_v58 }
 0x10e   :  { %3187 = vtanh.f32 %v318_v59  ;;  %v2484_v0 = vpop.f32.mrb[14].mxu0  ;;  %2551 = vmatmul.mubr.f32.gmra.mrb[6].mxu1 %v3793_v61 }
 0x10f   :  { %3189 = vtanh.f32 %v323_v56  ;;  %v333_v1 = vadd.f32 %v2484_v0, %v3757_v12  ;;  %v327_v2 = vpop.f32.mrb[15].mxu0  ;;  %2948 = vmatpush3.bf16.msra.mxu1 %v2945_v51 }
 0x110   :  { %v3798_v3 = vpop.eup %3179  ;;  %v328_v4 = vadd.f32 %v3757_v12, %v327_v2  ;;  %2950 = vmatprep.subr.bf16.mxu1 %v2949_v60 }
 0x111   :  { %v3801_v6 = vpop.eup %3181  ;;  %2553 = vmatprep.mubr.f32.mxu1 %v3798_v3 }
 0x112   :  { %3191 = vtanh.f32 %v328_v4  ;;  %v2487_v9 = vpop.f32.mrb[16].mxu0  ;;  %2554 = vmatmul.mubr.f32.gmra.mrb[8].mxu1 %v3801_v6 }
 0x113   :  { %3193 = vtanh.f32 %v333_v1  ;;  %v343_v10 = vadd.f32 %v2487_v9, %v3757_v12  ;;  %v337_v11 = vpop.f32.mrb[17].mxu0  ;;  %2952 = vmatpush3.bf16.msra.mxu1 %v2949_v60 }
 0x114   :  { %v3806_v13 = vpop.eup %3183  ;;  %v338_v14 = vadd.f32 %v3757_v12, %v337_v11  ;;  %2954 = vmatprep.subr.bf16.mxu1 %v2953_v5 }
 0x115   :  { %v3809_v16 = vpop.eup %3185  ;;  %3195 = vtanh.f32 %v343_v10  ;;  %2556 = vmatprep.mubr.f32.mxu1 %v3806_v13 }
 0x116   :  { %3197 = vtanh.f32 %v338_v14  ;;  %v2490_v17 = vpop.f32.mrb[18].mxu0  ;;  %2557 = vmatmul.mubr.f32.gmra.mrb[10].mxu1 %v3809_v16 }
 0x117   :  { %v353_v18 = vadd.f32 %v2490_v17, %v3757_v12  ;;  %v347_v19 = vpop.f32.mrb[19].mxu0  ;;  %2956 = vmatpush3.bf16.msra.mxu1 %v2953_v5 }
 0x118   :  { %v3814_v20 = vpop.eup %3187  ;;  %v348_v21 = vadd.f32 %v3757_v12, %v347_v19  ;;  %2958 = vmatprep.subr.bf16.mxu1 %v2957_v15 }
 0x119   :  { %v3817_v22 = vpop.eup %3189  ;;  %3199 = vtanh.f32 %v353_v18  ;;  %2559 = vmatprep.mubr.f32.mxu1 %v3814_v20 }
 0x11a   :  { %3201 = vtanh.f32 %v348_v21  ;;  %v2493_v23 = vpop.f32.mrb[20].mxu0  ;;  %2560 = vmatmul.mubr.f32.gmra.mrb[12].mxu1 %v3817_v22 }
 0x11b   :  { %v363_v24 = vadd.f32 %v2493_v23, %v3757_v12  ;;  %v357_v25 = vpop.f32.mrb[21].mxu0  ;;  %2960 = vmatpush3.bf16.msra.mxu1 %v2957_v15 }
 0x11c   :  { %v3822_v26 = vpop.eup %3191  ;;  %v358_v27 = vadd.f32 %v3757_v12, %v357_v25 }
 0x11d   :  { %v3825_v28 = vpop.eup %3193  ;;  %3203 = vtanh.f32 %v363_v24  ;;  %2562 = vmatprep.mubr.f32.mxu1 %v3822_v26 }
 0x11e   :  { %3205 = vtanh.f32 %v358_v27  ;;  %v2496_v29 = vpop.f32.mrb[22].mxu0  ;;  %2563 = vmatmul.mubr.f32.gmra.mrb[14].mxu1 %v3825_v28 }
 0x11f   :  { %v3196_v30 = vpop.eup %3195  ;;  %v373_v32 = vadd.f32 %v2496_v29, %v3757_v12  ;;  %v367_v33 = vpop.f32.mrb[23].mxu0 }
 0x120   :  { %v3198_v35 = vpop.eup %3197  ;;  %v368_v36 = vadd.f32 %v3757_v12, %v367_v33  ;;  %v1041_v37 = vadd.f32 %v3196_v30, %v3769_v34 }
 0x121   :  { %3207 = vtanh.f32 %v373_v32  ;;  %2565 = vmatprep.mubr.f32.mxu1 %v3198_v35  ;;  %v1040_v38 = vadd.f32 %v3198_v35, %v3766_v31 }
 0x122   :  { %3209 = vtanh.f32 %v368_v36  ;;  %v2499_v39 = vpop.f32.mrb[24].mxu0  ;;  %2566 = vmatmul.mubr.f32.gmra.mrb[16].mxu1 %v3196_v30  ;;  %v3833_v41 = vmul.f32 0.5, %v1041_v37 }
 0x123   :  { %v3200_v42 = vpop.eup %3199  ;;  %v383_v44 = vadd.f32 %v2499_v39, %v3757_v12  ;;  %v377_v45 = vpop.f32.mrb[25].mxu0  ;;  %v3836_v46 = vmul.f32 0.5, %v1040_v38 }
 0x124   :  { %v3202_v47 = vpop.eup %3201  ;;  %v378_v48 = vadd.f32 %v3757_v12, %v377_v45  ;;  %v1043_v34 = vadd.f32 %v3200_v42, %v3777_v43  ;;  %v1073_v51 = vmul.f32 %v3833_v41, %v3833_v41 }
 0x125   :  { %3211 = vtanh.f32 %v383_v44  ;;  %2568 = vmatprep.mubr.f32.mxu1 %v3202_v47  ;;  %v1042_v31 = vadd.f32 %v3202_v47, %v3774_v40  ;;  %v1072_v50 = vmul.f32 %v3836_v46, %v3836_v46 }
 0x126   :  { %3213 = vtanh.f32 %v378_v48  ;;  %v2502_v53 = vpop.f32.mrb[26].mxu0  ;;  %2569 = vmatmul.mubr.f32.gmra.mrb[18].mxu1 %v3200_v42  ;;  %v3848_v43 = vmul.f32 0.5, %v1043_v34 }
 0x127   :  { %v3204_v54 = vpop.eup %3203  ;;  %v393_v55 = vadd.f32 %v2502_v53, %v3757_v12  ;;  %v387_v56 = vpop.f32.mrb[27].mxu0  ;;  %v3846_v57 = vmul.f32 0.5, %v1042_v31  ;;  %v1088_v0 = vadd.f32 %v1073_v51, %v1072_v50 }
 0x128   :  { %v3206_v59 = vpop.eup %3205  ;;  %v388_v40 = vadd.f32 %v3757_v12, %v387_v56  ;;  %v1045_v60 = vadd.f32 %v3204_v54, %v3785_v52  ;;  %v1075_v52 = vmul.f32 %v3848_v43, %v3848_v43 }
 0x129   :  { %3215 = vtanh.f32 %v393_v55  ;;  %2571 = vmatprep.mubr.f32.mxu1 %v3206_v59  ;;  %v1044_v62 = vadd.f32 %v3206_v59, %v3782_v49  ;;  %v1074_v63 = vmul.f32 %v3846_v57, %v3846_v57 }
 0x12a   :  { %3217 = vtanh.f32 %v388_v40  ;;  %v2505_v1 = vpop.f32.mrb[28].mxu0  ;;  %2572 = vmatmul.mubr.f32.gmra.mrb[20].mxu1 %v3204_v54  ;;  %v3855_v2 = vmul.f32 0.5, %v1045_v60 }
 0x12b   :  { %v3208_v4 = vpop.eup %3207  ;;  %v403_v5 = vadd.f32 %v2505_v1, %v3757_v12  ;;  %v397_v7 = vpop.f32.mrb[29].mxu0  ;;  %v3858_v8 = vmul.f32 0.5, %v1044_v62  ;;  %v1089_v9 = vadd.f32 %v1088_v0, %v1074_v63 }
 0x12c   :  { %v3210_v49 = vpop.eup %3209  ;;  %v398_v10 = vadd.f32 %v3757_v12, %v397_v7  ;;  %v1047_v11 = vadd.f32 %v3208_v4, %v3793_v61  ;;  %v1077_v19 = vmul.f32 %v3855_v2, %v3855_v2 }
 0x12d   :  { %3219 = vtanh.f32 %v403_v5  ;;  %2574 = vmatprep.mubr.f32.mxu1 %v3210_v49  ;;  %v1046_v14 = vadd.f32 %v3210_v49, %v3790_v58  ;;  %v1076_v15 = vmul.f32 %v3858_v8, %v3858_v8  ;;  %v1090_v17 = vadd.f32 %v1089_v9, %v1075_v52 }
 0x12e   :  { %3221 = vtanh.f32 %v398_v10  ;;  %v2508_v18 = vpop.f32.mrb[30].mxu0  ;;  %2575 = vmatmul.mubr.f32.gmra.mrb[22].mxu1 %v3208_v4  ;;  %v3872_v61 = vmul.f32 0.5, %v1047_v11 }
 0x12f   :  { %v3212_v21 = vpop.eup %3211  ;;  %v413_v23 = vadd.f32 %v2508_v18, %v3757_v12  ;;  %v407_v24 = vpop.f32.mrb[31].mxu0  ;;  %v3870_v25 = vmul.f32 0.5, %v1046_v14  ;;  %v1091_v27 = vadd.f32 %v1090_v17, %v1076_v15 }
 0x130   :  { %v3214_v58 = vpop.eup %3213  ;;  %v408_v29 = vadd.f32 %v3757_v12, %v407_v24  ;;  %v1049_v30 = vadd.f32 %v3212_v21, %v3801_v6  ;;  %v1079_v12 = vmul.f32 %v3872_v61, %v3872_v61  ;;  %v738_v24 = vld [vmem:[%s4749_s5 + $0x50] sm:$0xff] }
 0x131   :  { %v1048_v32 = vadd.f32 %v3214_v58, %v3798_v3  ;;  %3223 = vtanh.f32 %v413_v23  ;;  %v1078_v33 = vmul.f32 %v3870_v25, %v3870_v25  ;;  %v1092_v35 = vadd.f32 %v1091_v27, %v1077_v19  ;;  %2577 = vmatprep.mubr.f32.mxu1 %v3214_v58  ;;  %v736_v19 = vld [vmem:[%s4749_s5 + $0x40] sm:$0xff]  ;;  %v739_v27 = vld [vmem:[%s4749_s5 + $0x58] sm:$0xff] }
 0x132   :  { %3225 = vtanh.f32 %v408_v29  ;;  %2578 = vmatmul.mubr.f32.gmra.mrb[24].mxu1 %v3212_v21  ;;  %v3881_v38 = vmul.f32 0.5, %v1049_v30  ;;  %v737_v21 = vld [vmem:[%s4749_s5 + $0x48] sm:$0xff]  ;;  %v2921_v58 = vpack.c.bf16 %v739_v27, %v738_v24  ;;  %v740_v29 = vld [vmem:[%s4749_s5 + $0x60] sm:$0xff] }
 0x133   :  { %v3216_v36 = vpop.eup %3215  ;;  %v3879_v37 = vmul.f32 0.5, %v1048_v32  ;;  %v1093_v39 = vadd.f32 %v1092_v35, %v1078_v33  ;;  %v2917_v23 = vpack.c.bf16 %v737_v21, %v736_v19  ;;  %v741_v30 = vld [vmem:[%s4749_s5 + $0x68] sm:$0xff] }
 0x134   :  { %v3218_v6 = vpop.eup %3217  ;;  %v1051_v3 = vadd.f32 %v3216_v36, %v3809_v16  ;;  %v1081_v31 = vmul.f32 %v3881_v38, %v3881_v38  ;;  %v2925_v32 = vpack.c.bf16 %v741_v30, %v740_v29 }
 0x135   :  { %v1050_v42 = vadd.f32 %v3218_v6, %v3806_v13  ;;  %v1080_v44 = vmul.f32 %v3879_v37, %v3879_v37  ;;  %v1094_v45 = vadd.f32 %v1093_v39, %v1079_v12  ;;  %2580 = vmatprep.mubr.f32.mxu1 %v3218_v6  ;;  %2918 = vmatprep.subr.bf16.mxu0 %v2917_v23  ;;  %v1259_v12 = vld [vmem:[#allocation2 + $0x78] sm:$0xff]  ;;  %v742_v39 = vld [vmem:[%s4749_s5 + $0x70] sm:$0xff] }
 0x136   :  { %2581 = vmatmul.mubr.f32.gmra.mrb[26].mxu1 %v3216_v36  ;;  %v3889_v48 = vmul.f32 0.5, %v1051_v3  ;;  %2920 = vmatpush3.bf16.msra.mxu0 %v2917_v23  ;;  %v1258_v36 = vld [vmem:[#allocation2 + $0x70] sm:$0xff] }
 0x137   :  { %v3220_v47 = vpop.eup %3219  ;;  %v3891_v34 = vmul.f32 0.5, %v1050_v42  ;;  %v1095_v50 = vadd.f32 %v1094_v45, %v1080_v44  ;;  %2922 = vmatprep.subr.bf16.mxu0 %v2921_v58  ;;  %v2961_v3 = vpack.c.bf16 %v1259_v12, %v1258_v36  ;;  %v743_v42 = vld [vmem:[%s4749_s5 + $0x78] sm:$0xff] }
 0x138   :  { %v3222_v51 = vpop.eup %3221  ;;  %v1053_v16 = vadd.f32 %v3220_v47, %v3817_v22  ;;  %v1083_v56 = vmul.f32 %v3889_v48, %v3889_v48  ;;  %v2929_v45 = vpack.c.bf16 %v743_v42, %v742_v39 }
 0x139   :  { %v1052_v13 = vadd.f32 %v3222_v51, %v3814_v20  ;;  %v1082_v53 = vmul.f32 %v3891_v34, %v3891_v34  ;;  %v1096_v54 = vadd.f32 %v1095_v50, %v1081_v31  ;;  %2583 = vmatprep.mubr.f32.mxu1 %v3222_v51  ;;  %2962 = vmatprep.subr.bf16.mxu1 %v2961_v3 }
 0x13a   :  { %2584 = vmatmul.mubr.f32.gmra.mrb[28].mxu1 %v3220_v47  ;;  %v3901_v59 = vmul.f32 0.5, %v1053_v16  ;;  %2924 = vmatpush3.bf16.msra.mxu0 %v2921_v58 }
 0x13b   :  { %v3224_v55 = vpop.eup %3223  ;;  %v3903_v40 = vmul.f32 0.5, %v1052_v13  ;;  %v1097_v60 = vadd.f32 %v1096_v54, %v1082_v53  ;;  %2926 = vmatprep.subr.bf16.mxu0 %v2925_v32  ;;  %2964 = vmatpush3.bf16.msra.mxu1 %v2961_v3 }
 0x13c   :  { %v3226_v62 = vpop.eup %3225  ;;  %v1055_v22 = vadd.f32 %v3224_v55, %v3825_v28  ;;  %v1085_v1 = vmul.f32 %v3901_v59, %v3901_v59 }
 0x13d   :  { %v1084_v20 = vmul.f32 %v3903_v40, %v3903_v40  ;;  %v1054_v63 = vadd.f32 %v3226_v62, %v3822_v26  ;;  %v1098_v0 = vadd.f32 %v1097_v60, %v1083_v56  ;;  %2586 = vmatprep.mubr.f32.mxu1 %v3226_v62 }
 0x13e   :  { %2587 = vmatmul.mubr.f32.gmra.mrb[30].mxu1 %v3224_v55  ;;  %v1071_v4 = vmul.f32 0.5, %v1055_v22  ;;  %2928 = vmatpush3.bf16.msra.mxu0 %v2925_v32 }
 0x13f   :  { %v1070_v5 = vmul.f32 0.5, %v1054_v63  ;;  %v1099_v7 = vadd.f32 %v1098_v0, %v1084_v20  ;;  %2930 = vmatprep.subr.bf16.mxu0 %v2929_v45 }
 0x140   :  { %v1087_v49 = vmul.f32 %v1071_v4, %v1071_v4 }
 0x141   :  { %v1086_v52 = vmul.f32 %v1070_v5, %v1070_v5  ;;  %v1100_v9 = vadd.f32 %v1099_v7, %v1085_v1 }
 0x142   :  { %2932 = vmatpush3.bf16.msra.mxu0 %v2929_v45 }
 0x143   :  { %v1101_v10 = vadd.f32 %v1100_v9, %v1086_v52 }
 0x145   :  { %v1102_v11 = vadd.f32 %v1101_v10, %v1087_v49 }
 0x147   :  { %v1103_v28 = vrot.slane %v1102_v11, 4 }
 0x149   :  { %v1104_v14 = vadd.f32 %v1103_v28, %v1102_v11 }
 0x14b   :  { %v1105_v15 = vrot.slane %v1104_v14, 2 }
 0x14d   :  { %v1106_v17 = vadd.f32 %v1105_v15, %v1104_v14 }
 0x14f   :  { %v1107_v18 = vrot.slane %v1106_v17, 1 }
 0x151   :  { %v1108_v26 = vadd.f32 %v1107_v18, %v1106_v17 }
 0x153   :  { %3227 = vrsqrt.f32 %v1108_v26  ;;  %vm1111_vm1 = vcmp.eq.f32.partialorder %v1108_v26, inf  ;;  %v1114_v6 = vand.u32 2147483648, %v1108_v26  ;;  %vm1113_vm2 = vcmp.eq.f32.partialorder %v1108_v26, 0.0 }
 0x15d   :  { %v3228_v33 = vpop.eup %3227 }
 0x15e   :  { %v1110_v35 = vmul.f32 %v3228_v33, %v1108_v26 }
 0x160   :  { %v1112_v44 = vsel %vm1111_vm1, %v1108_v26, %v1110_v35 }
 0x161   :  { %v1115_v47 = vsel %vm1113_vm2, %v1114_v6, %v1112_v44 }
 0x162   :  { %v1116_v31 = vmax.f32 %v1115_v47, 1e-12 }
 0x164   :  { %3229 = vrcp.f32 %v1116_v31 }
 0x16e   :  { %v3935_v50 = vpop.eup %3229 }
 0x16f   :  { %v3939_v51 = vmul.f32 %v3935_v50, %v3872_v61  ;;  %v3943_v16 = vmul.f32 %v3935_v50, %v3870_v25  ;;  %v3947_v13 = vmul.f32 %v3935_v50, %v3881_v38  ;;  %v3951_v53 = vmul.f32 %v3935_v50, %v3879_v37 }
 0x170   :  { %v3955_v54 = vmul.f32 %v3935_v50, %v3889_v48  ;;  %v3959_v61 = vmul.f32 %v3935_v50, %v3891_v34  ;;  %v3963_v25 = vmul.f32 %v3935_v50, %v3901_v59  ;;  %v3967_v38 = vmul.f32 %v3935_v50, %v3903_v40  ;;  %v3978_v48 = vld [vmem:[%s4748_s4] ss:$0 sm:$0xff] }
 0x171   :  { %v3970_v55 = vmul.f32 %v3935_v50, %v1071_v4  ;;  %v3973_v37 = vmul.f32 %v3935_v50, %v1070_v5 }
 0x1d5   :  { %v2543_v34 = vpop.f32.mrb[0].mxu1 }
 0x1d6   :  { %v543_v56 = vadd.f32 %v2543_v34, %v3978_v48  ;;  %v537_v59 = vpop.f32.mrb[1].mxu1 }
 0x1d7   :  { %v538_v60 = vadd.f32 %v3978_v48, %v537_v59 }
 0x1d8   :  { %3231 = vtanh.f32 %v543_v56 }
 0x1d9   :  { %3233 = vtanh.f32 %v538_v60  ;;  %v2546_v40 = vpop.f32.mrb[2].mxu1 }
 0x1da   :  { %v553_v62 = vadd.f32 %v2546_v40, %v3978_v48  ;;  %v547_v22 = vpop.f32.mrb[3].mxu1 }
 0x1db   :  { %v548_v20 = vadd.f32 %v3978_v48, %v547_v22 }
 0x1dc   :  { %3235 = vtanh.f32 %v553_v62 }
 0x1dd   :  { %3237 = vtanh.f32 %v548_v20  ;;  %v2549_v63 = vpop.f32.mrb[4].mxu1 }
 0x1de   :  { %v563_v0 = vadd.f32 %v2549_v63, %v3978_v48  ;;  %v557_v1 = vpop.f32.mrb[5].mxu1 }
 0x1df   :  { %v558_v4 = vadd.f32 %v3978_v48, %v557_v1 }
 0x1e0   :  { %3239 = vtanh.f32 %v563_v0 }
 0x1e1   :  { %3241 = vtanh.f32 %v558_v4  ;;  %v2552_v5 = vpop.f32.mrb[6].mxu1 }
 0x1e2   :  { %v3986_v7 = vpop.eup %3231  ;;  %v573_v52 = vadd.f32 %v2552_v5, %v3978_v48  ;;  %v567_v9 = vpop.f32.mrb[7].mxu1 }
 0x1e3   :  { %v3989_v49 = vpop.eup %3233  ;;  %977 = vst [vmem:[#allocation6 + $0x8] sm:$0xff] %v3986_v7  ;;  %v568_v10 = vadd.f32 %v3978_v48, %v567_v9 }
 0x1e4   :  { %976 = vst [vmem:[#allocation6] sm:$0xff] %v3989_v49  ;;  %3243 = vtanh.f32 %v573_v52  ;;  %2621 = vmatprep.mubr.f32.mxu0 %v3989_v49  ;;  %2701 = vmatprep.mubr.f32.mxu1 %v3989_v49  ;;  %v2965_v11 = vpack.c.bf16 %v3986_v7, %v3989_v49 }
 0x1e5   :  { %3245 = vtanh.f32 %v568_v10  ;;  %v2555_v28 = vpop.f32.mrb[8].mxu1  ;;  %2622 = vmatmul.mubr.f32.vlgmr.msra.gmra.mrb[32].mxu0 %v3986_v7  ;;  %2702 = vmatmul.mubr.f32.vlgmr.msra.gmra.mrb[32].mxu1 %v3986_v7 }
 0x1e6   :  { %v4000_v14 = vpop.eup %3235  ;;  %v583_v15 = vadd.f32 %v2555_v28, %v3978_v48  ;;  %v577_v17 = vpop.f32.mrb[9].mxu1  ;;  %2966 = vmatprep.subr.bf16.mxu0 %v2965_v11 }
 0x1e7   :  { %v4003_v18 = vpop.eup %3237  ;;  %979 = vst [vmem:[#allocation6 + $0x18] sm:$0xff] %v4000_v14  ;;  %v578_v26 = vadd.f32 %v3978_v48, %v577_v17  ;;  %2968 = vmatpush3.bf16.msra.mxu0 %v2965_v11 }
 0x1e8   :  { %978 = vst [vmem:[#allocation6 + $0x10] sm:$0xff] %v4003_v18  ;;  %3247 = vtanh.f32 %v583_v15  ;;  %2624 = vmatprep.mubr.f32.mxu0 %v4003_v18  ;;  %2704 = vmatprep.mubr.f32.mxu1 %v4003_v18  ;;  %v2969_v19 = vpack.c.bf16 %v4000_v14, %v4003_v18 }
 0x1e9   :  { %3249 = vtanh.f32 %v578_v26  ;;  %v2558_v21 = vpop.f32.mrb[10].mxu1  ;;  %2625 = vmatmul.mubr.f32.gmra.mrb[34].mxu0 %v4000_v14  ;;  %2705 = vmatmul.mubr.f32.gmra.mrb[34].mxu1 %v4000_v14 }
 0x1ea   :  { %v4014_v23 = vpop.eup %3239  ;;  %v593_v24 = vadd.f32 %v2558_v21, %v3978_v48  ;;  %v587_v27 = vpop.f32.mrb[11].mxu1  ;;  %2970 = vmatprep.subr.bf16.mxu0 %v2969_v19 }
 0x1eb   :  { %v4017_v58 = vpop.eup %3241  ;;  %981 = vst [vmem:[#allocation6 + $0x28] sm:$0xff] %v4014_v23  ;;  %v588_v29 = vadd.f32 %v3978_v48, %v587_v27  ;;  %2972 = vmatpush3.bf16.msra.mxu0 %v2969_v19 }
 0x1ec   :  { %980 = vst [vmem:[#allocation6 + $0x20] sm:$0xff] %v4017_v58  ;;  %3251 = vtanh.f32 %v593_v24  ;;  %2627 = vmatprep.mubr.f32.mxu0 %v4017_v58  ;;  %2707 = vmatprep.mubr.f32.mxu1 %v4017_v58  ;;  %v2973_v30 = vpack.c.bf16 %v4014_v23, %v4017_v58 }
 0x1ed   :  { %3253 = vtanh.f32 %v588_v29  ;;  %v2561_v32 = vpop.f32.mrb[12].mxu1  ;;  %2628 = vmatmul.mubr.f32.gmra.mrb[36].mxu0 %v4014_v23  ;;  %2708 = vmatmul.mubr.f32.gmra.mrb[36].mxu1 %v4014_v23 }
 0x1ee   :  { %v4028_v33 = vpop.eup %3243  ;;  %v603_v35 = vadd.f32 %v2561_v32, %v3978_v48  ;;  %v597_v36 = vpop.f32.mrb[13].mxu1  ;;  %2974 = vmatprep.subr.bf16.mxu0 %v2973_v30 }
 0x1ef   :  { %v4031_v12 = vpop.eup %3245  ;;  %983 = vst [vmem:[#allocation6 + $0x38] sm:$0xff] %v4028_v33  ;;  %v598_v39 = vadd.f32 %v3978_v48, %v597_v36  ;;  %2976 = vmatpush3.bf16.msra.mxu0 %v2973_v30 }
 0x1f0   :  { %982 = vst [vmem:[#allocation6 + $0x30] sm:$0xff] %v4031_v12  ;;  %3255 = vtanh.f32 %v603_v35  ;;  %2630 = vmatprep.mubr.f32.mxu0 %v4031_v12  ;;  %2710 = vmatprep.mubr.f32.mxu1 %v4031_v12  ;;  %v2977_v6 = vpack.c.bf16 %v4028_v33, %v4031_v12 }
 0x1f1   :  { %3257 = vtanh.f32 %v598_v39  ;;  %v2564_v3 = vpop.f32.mrb[14].mxu1  ;;  %2631 = vmatmul.mubr.f32.gmra.mrb[38].mxu0 %v4028_v33  ;;  %2711 = vmatmul.mubr.f32.gmra.mrb[38].mxu1 %v4028_v33 }
 0x1f2   :  { %v4042_v42 = vpop.eup %3247  ;;  %v613_v44 = vadd.f32 %v2564_v3, %v3978_v48  ;;  %v607_v45 = vpop.f32.mrb[15].mxu1  ;;  %2978 = vmatprep.subr.bf16.mxu0 %v2977_v6 }
 0x1f3   :  { %v4045_v47 = vpop.eup %3249  ;;  %985 = vst [vmem:[#allocation6 + $0x48] sm:$0xff] %v4042_v42  ;;  %v608_v31 = vadd.f32 %v3978_v48, %v607_v45  ;;  %2980 = vmatpush3.bf16.msra.mxu0 %v2977_v6 }
 0x1f4   :  { %984 = vst [vmem:[#allocation6 + $0x40] sm:$0xff] %v4045_v47  ;;  %3259 = vtanh.f32 %v613_v44  ;;  %2633 = vmatprep.mubr.f32.mxu0 %v4045_v47  ;;  %2713 = vmatprep.mubr.f32.mxu1 %v4045_v47  ;;  %v2981_v34 = vpack.c.bf16 %v4042_v42, %v4045_v47 }
 0x1f5   :  { %3261 = vtanh.f32 %v608_v31  ;;  %v2567_v56 = vpop.f32.mrb[16].mxu1  ;;  %2634 = vmatmul.mubr.f32.gmra.mrb[40].mxu0 %v4042_v42  ;;  %2714 = vmatmul.mubr.f32.gmra.mrb[40].mxu1 %v4042_v42 }
 0x1f6   :  { %v4056_v59 = vpop.eup %3251  ;;  %v623_v60 = vadd.f32 %v2567_v56, %v3978_v48  ;;  %v617_v40 = vpop.f32.mrb[17].mxu1  ;;  %2982 = vmatprep.subr.bf16.mxu0 %v2981_v34 }
 0x1f7   :  { %v4059_v62 = vpop.eup %3253  ;;  %987 = vst [vmem:[#allocation6 + $0x58] sm:$0xff] %v4056_v59  ;;  %v618_v22 = vadd.f32 %v3978_v48, %v617_v40  ;;  %2984 = vmatpush3.bf16.msra.mxu0 %v2981_v34 }
 0x1f8   :  { %986 = vst [vmem:[#allocation6 + $0x50] sm:$0xff] %v4059_v62  ;;  %3263 = vtanh.f32 %v623_v60  ;;  %2636 = vmatprep.mubr.f32.mxu0 %v4059_v62  ;;  %2716 = vmatprep.mubr.f32.mxu1 %v4059_v62  ;;  %v2985_v20 = vpack.c.bf16 %v4056_v59, %v4059_v62 }
 0x1f9   :  { %3265 = vtanh.f32 %v618_v22  ;;  %v2570_v63 = vpop.f32.mrb[18].mxu1  ;;  %2637 = vmatmul.mubr.f32.gmra.mrb[42].mxu0 %v4056_v59  ;;  %2717 = vmatmul.mubr.f32.gmra.mrb[42].mxu1 %v4056_v59 }
 0x1fa   :  { %v4070_v0 = vpop.eup %3255  ;;  %v633_v1 = vadd.f32 %v2570_v63, %v3978_v48  ;;  %v627_v4 = vpop.f32.mrb[19].mxu1  ;;  %2986 = vmatprep.subr.bf16.mxu0 %v2985_v20 }
 0x1fb   :  { %v4073_v5 = vpop.eup %3257  ;;  %989 = vst [vmem:[#allocation6 + $0x68] sm:$0xff] %v4070_v0  ;;  %v628_v52 = vadd.f32 %v3978_v48, %v627_v4  ;;  %2988 = vmatpush3.bf16.msra.mxu0 %v2985_v20 }
 0x1fc   :  { %988 = vst [vmem:[#allocation6 + $0x60] sm:$0xff] %v4073_v5  ;;  %3267 = vtanh.f32 %v633_v1  ;;  %2639 = vmatprep.mubr.f32.mxu0 %v4073_v5  ;;  %2719 = vmatprep.mubr.f32.mxu1 %v4073_v5  ;;  %v2989_v9 = vpack.c.bf16 %v4070_v0, %v4073_v5 }
 0x1fd   :  { %3269 = vtanh.f32 %v628_v52  ;;  %v2573_v10 = vpop.f32.mrb[20].mxu1  ;;  %2640 = vmatmul.mubr.f32.gmra.mrb[44].mxu0 %v4070_v0  ;;  %2720 = vmatmul.mubr.f32.gmra.mrb[44].mxu1 %v4070_v0 }
 0x1fe   :  { %v4084_v11 = vpop.eup %3259  ;;  %v643_v28 = vadd.f32 %v2573_v10, %v3978_v48  ;;  %v637_v15 = vpop.f32.mrb[21].mxu1  ;;  %2990 = vmatprep.subr.bf16.mxu0 %v2989_v9 }
 0x1ff   :  { %v4087_v17 = vpop.eup %3261  ;;  %991 = vst [vmem:[#allocation6 + $0x78] sm:$0xff] %v4084_v11  ;;  %v638_v26 = vadd.f32 %v3978_v48, %v637_v15  ;;  %2992 = vmatpush3.bf16.msra.mxu0 %v2989_v9 }
 0x200   :  { %990 = vst [vmem:[#allocation6 + $0x70] sm:$0xff] %v4087_v17  ;;  %3271 = vtanh.f32 %v643_v28  ;;  %2642 = vmatprep.mubr.f32.mxu0 %v4087_v17  ;;  %2722 = vmatprep.mubr.f32.mxu1 %v4087_v17  ;;  %v2993_v19 = vpack.c.bf16 %v4084_v11, %v4087_v17 }
 0x201   :  { %3273 = vtanh.f32 %v638_v26  ;;  %v2576_v21 = vpop.f32.mrb[22].mxu1  ;;  %2643 = vmatmul.mubr.f32.gmra.mrb[46].mxu0 %v4084_v11  ;;  %2723 = vmatmul.mubr.f32.gmra.mrb[46].mxu1 %v4084_v11 }
 0x202   :  { %v3264_v24 = vpop.eup %3263  ;;  %v653_v27 = vadd.f32 %v2576_v21, %v3978_v48  ;;  %v647_v29 = vpop.f32.mrb[23].mxu1  ;;  %2994 = vmatprep.subr.bf16.mxu0 %v2993_v19 }
 0x203   :  { %v3266_v30 = vpop.eup %3265  ;;  %993 = vst [vmem:[#allocation6 + $0x88] sm:$0xff] %v3264_v24  ;;  %v648_v32 = vadd.f32 %v3978_v48, %v647_v29  ;;  %2996 = vmatpush3.bf16.msra.mxu0 %v2993_v19  ;;  %v1135_v35 = vadd.f32 %v3264_v24, %v3986_v7 }
 0x204   :  { %992 = vst [vmem:[#allocation6 + $0x80] sm:$0xff] %v3266_v30  ;;  %3275 = vtanh.f32 %v653_v27  ;;  %2645 = vmatprep.mubr.f32.mxu0 %v3266_v30  ;;  %2725 = vmatprep.mubr.f32.mxu1 %v3266_v30  ;;  %v4101_v36 = vpack.c.bf16 %v3264_v24, %v3266_v30  ;;  %v1134_v39 = vadd.f32 %v3266_v30, %v3989_v49 }
 0x205   :  { %3277 = vtanh.f32 %v648_v32  ;;  %v2579_v6 = vpop.f32.mrb[24].mxu1  ;;  %2646 = vmatmul.mubr.f32.gmra.mrb[48].mxu0 %v3264_v24  ;;  %2726 = vmatmul.mubr.f32.gmra.mrb[48].mxu1 %v3264_v24  ;;  %v4104_v3 = vmul.f32 0.5, %v1135_v35 }
 0x206   :  { %v3268_v44 = vpop.eup %3267  ;;  %v663_v45 = vadd.f32 %v2579_v6, %v3978_v48  ;;  %v657_v31 = vpop.f32.mrb[25].mxu1  ;;  %2998 = vmatprep.subr.bf16.mxu0 %v4101_v36  ;;  %3029 = vmatprep.subr.bf16.mxu1 %v4101_v36  ;;  %v4109_v7 = vmul.f32 0.5, %v1134_v39 }
 0x207   :  { %v3270_v34 = vpop.eup %3269  ;;  %995 = vst [vmem:[#allocation6 + $0x98] sm:$0xff] %v3268_v44  ;;  %v658_v49 = vadd.f32 %v3978_v48, %v657_v31  ;;  %3037 = vmatpush3.bf16.msra.mxu1 %v4101_v36  ;;  %v1137_v56 = vadd.f32 %v3268_v44, %v4000_v14  ;;  %v1167_v60 = vmul.f32 %v4104_v3, %v4104_v3 }
 0x208   :  { %994 = vst [vmem:[#allocation6 + $0x90] sm:$0xff] %v3270_v34  ;;  %3279 = vtanh.f32 %v663_v45  ;;  %2648 = vmatprep.mubr.f32.mxu0 %v3270_v34  ;;  %2728 = vmatprep.mubr.f32.mxu1 %v3270_v34  ;;  %v4116_v40 = vpack.c.bf16 %v3268_v44, %v3270_v34  ;;  %v1136_v22 = vadd.f32 %v3270_v34, %v4003_v18 }
 0x209   :  { %v1166_v20 = vmul.f32 %v4109_v7, %v4109_v7  ;;  %3281 = vtanh.f32 %v658_v49  ;;  %v2582_v63 = vpop.f32.mrb[26].mxu1  ;;  %2649 = vmatmul.mubr.f32.gmra.mrb[50].mxu0 %v3268_v44  ;;  %2729 = vmatmul.mubr.f32.gmra.mrb[50].mxu1 %v3268_v44  ;;  %v4125_v9 = vmul.f32 0.5, %v1137_v56 }
 0x20a   :  { %v3272_v1 = vpop.eup %3271  ;;  %v673_v14 = vadd.f32 %v2582_v63, %v3978_v48  ;;  %v667_v4 = vpop.f32.mrb[27].mxu1  ;;  %3030 = vmatprep.subr.bf16.mxu1 %v4116_v40  ;;  %v4123_v52 = vmul.f32 0.5, %v1136_v22 }
 0x20b   :  { %v3274_v10 = vpop.eup %3273  ;;  %997 = vst [vmem:[#allocation6 + $0xa8] sm:$0xff] %v3272_v1  ;;  %v668_v18 = vadd.f32 %v3978_v48, %v667_v4  ;;  %3038 = vmatpush3.bf16.msra.mxu1 %v4116_v40  ;;  %v1139_v28 = vadd.f32 %v3272_v1, %v4014_v23  ;;  %v1182_v15 = vadd.f32 %v1167_v60, %v1166_v20 }
 0x20c   :  { %996 = vst [vmem:[#allocation6 + $0xa0] sm:$0xff] %v3274_v10  ;;  %3283 = vtanh.f32 %v673_v14  ;;  %2651 = vmatprep.mubr.f32.mxu0 %v3274_v10  ;;  %2731 = vmatprep.mubr.f32.mxu1 %v3274_v10  ;;  %v4130_v26 = vpack.c.bf16 %v3272_v1, %v3274_v10  ;;  %v1138_v19 = vadd.f32 %v3274_v10, %v4017_v58 }
 0x20d   :  { %v1168_v21 = vmul.f32 %v4123_v52, %v4123_v52  ;;  %3285 = vtanh.f32 %v668_v18  ;;  %v2585_v24 = vpop.f32.mrb[28].mxu1  ;;  %2652 = vmatmul.mubr.f32.gmra.mrb[52].mxu0 %v3272_v1  ;;  %2732 = vmatmul.mubr.f32.gmra.mrb[52].mxu1 %v3272_v1  ;;  %v4135_v27 = vmul.f32 0.5, %v1139_v28  ;;  %v1169_v58 = vmul.f32 %v4125_v9, %v4125_v9 }
 0x20e   :  { %v3276_v29 = vpop.eup %3275  ;;  %v683_v23 = vadd.f32 %v2585_v24, %v3978_v48  ;;  %v677_v30 = vpop.f32.mrb[29].mxu1  ;;  %3031 = vmatprep.subr.bf16.mxu1 %v4130_v26  ;;  %v4139_v32 = vmul.f32 0.5, %v1138_v19 }
 0x20f   :  { %v1183_v35 = vadd.f32 %v1182_v15, %v1168_v21  ;;  %v3278_v39 = vpop.eup %3277  ;;  %999 = vst [vmem:[#allocation6 + $0xb8] sm:$0xff] %v3276_v29  ;;  %v678_v6 = vadd.f32 %v3978_v48, %v677_v30  ;;  %3039 = vmatpush3.bf16.msra.mxu1 %v4130_v26  ;;  %v1141_v44 = vadd.f32 %v3276_v29, %v4028_v33 }
 0x210   :  { %998 = vst [vmem:[#allocation6 + $0xb0] sm:$0xff] %v3278_v39  ;;  %3287 = vtanh.f32 %v683_v23  ;;  %2654 = vmatprep.mubr.f32.mxu0 %v3278_v39  ;;  %2734 = vmatprep.mubr.f32.mxu1 %v3278_v39  ;;  %v1140_v45 = vadd.f32 %v3278_v39, %v4031_v12  ;;  %v1170_v31 = vmul.f32 %v4139_v32, %v4139_v32 }
 0x211   :  { %v1184_v34 = vadd.f32 %v1183_v35, %v1169_v58  ;;  %3289 = vtanh.f32 %v678_v6  ;;  %v2588_v49 = vpop.f32.mrb[30].mxu1  ;;  %2655 = vmatmul.mubr.f32.gmra.mrb[54].mxu0 %v3276_v29  ;;  %2735 = vmatmul.mubr.f32.gmra.mrb[54].mxu1 %v3276_v29  ;;  %v1171_v56 = vmul.f32 %v4135_v27, %v4135_v27  ;;  %v4151_v60 = vpack.c.bf16 %v3276_v29, %v3278_v39 }
 0x212   :  { %v3280_v33 = vpop.eup %3279  ;;  %v693_v22 = vadd.f32 %v2588_v49, %v3978_v48  ;;  %v687_v20 = vpop.f32.mrb[31].mxu1  ;;  %v4154_v63 = vmul.f32 0.5, %v1140_v45  ;;  %v4156_v12 = vmul.f32 0.5, %v1141_v44 }
 0x213   :  { %v1185_v1 = vadd.f32 %v1184_v34, %v1170_v31  ;;  %v3282_v14 = vpop.eup %3281  ;;  %1001 = vst [vmem:[#allocation6 + $0xc8] sm:$0xff] %v3280_v33  ;;  %v688_v4 = vadd.f32 %v3978_v48, %v687_v20  ;;  %v1143_v10 = vadd.f32 %v3280_v33, %v4042_v42  ;;  %3032 = vmatprep.subr.bf16.mxu1 %v4151_v60 }
 0x214   :  { %1000 = vst [vmem:[#allocation6 + $0xc0] sm:$0xff] %v3282_v14  ;;  %3291 = vtanh.f32 %v693_v22  ;;  %v1142_v18 = vadd.f32 %v3282_v14, %v4045_v47  ;;  %v1172_v28 = vmul.f32 %v4154_v63, %v4154_v63  ;;  %3040 = vmatpush3.bf16.msra.mxu1 %v4151_v60  ;;  %2657 = vmatprep.mubr.f32.mxu0 %v3282_v14 }
 0x215   :  { %v1186_v15 = vadd.f32 %v1185_v1, %v1171_v56  ;;  %3293 = vtanh.f32 %v688_v4  ;;  %2737 = vmatprep.mubr.f32.mxu1 %v3282_v14  ;;  %2658 = vmatmul.mubr.f32.gmra.mrb[56].mxu0 %v3280_v33  ;;  %v4165_v19 = vpack.c.bf16 %v3280_v33, %v3282_v14  ;;  %v4169_v21 = vmul.f32 0.5, %v1143_v10 }
 0x216   :  { %v3284_v48 = vpop.eup %3283  ;;  %v4167_v42 = vmul.f32 0.5, %v1142_v18  ;;  %v1173_v47 = vmul.f32 %v4156_v12, %v4156_v12  ;;  %2738 = vmatmul.mubr.f32.gmra.mrb[56].mxu1 %v3280_v33 }
 0x217   :  { %v1187_v24 = vadd.f32 %v1186_v15, %v1172_v28  ;;  %v3286_v29 = vpop.eup %3285  ;;  %1003 = vst [vmem:[#allocation6 + $0xd8] sm:$0xff] %v3284_v48  ;;  %v1145_v23 = vadd.f32 %v3284_v48, %v4056_v59  ;;  %3033 = vmatprep.subr.bf16.mxu1 %v4165_v19  ;;  %v1175_v45 = vmul.f32 %v4169_v21, %v4169_v21 }
 0x218   :  { %1002 = vst [vmem:[#allocation6 + $0xd0] sm:$0xff] %v3286_v29  ;;  %v1144_v30 = vadd.f32 %v3286_v29, %v4059_v62  ;;  %v1174_v58 = vmul.f32 %v4167_v42, %v4167_v42  ;;  %3041 = vmatpush3.bf16.msra.mxu1 %v4165_v19  ;;  %2660 = vmatprep.mubr.f32.mxu0 %v3286_v29 }
 0x219   :  { %v1188_v35 = vadd.f32 %v1187_v24, %v1173_v47  ;;  %2740 = vmatprep.mubr.f32.mxu1 %v3286_v29  ;;  %2661 = vmatmul.mubr.f32.gmra.mrb[58].mxu0 %v3284_v48  ;;  %v4179_v39 = vpack.c.bf16 %v3284_v48, %v3286_v29  ;;  %v4181_v44 = vmul.f32 0.5, %v1145_v23 }
 0x21a   :  { %v3288_v6 = vpop.eup %3287  ;;  %v4183_v59 = vmul.f32 0.5, %v1144_v30  ;;  %2741 = vmatmul.mubr.f32.gmra.mrb[58].mxu1 %v3284_v48 }
 0x21b   :  { %v1189_v62 = vadd.f32 %v1188_v35, %v1174_v58  ;;  %v3290_v31 = vpop.eup %3289  ;;  %1005 = vst [vmem:[#allocation6 + $0xe8] sm:$0xff] %v3288_v6  ;;  %v1147_v34 = vadd.f32 %v3288_v6, %v4070_v0  ;;  %3034 = vmatprep.subr.bf16.mxu1 %v4179_v39  ;;  %v1177_v14 = vmul.f32 %v4181_v44, %v4181_v44 }
 0x21c   :  { %1004 = vst [vmem:[#allocation6 + $0xe0] sm:$0xff] %v3290_v31  ;;  %v1146_v49 = vadd.f32 %v3290_v31, %v4073_v5  ;;  %v1176_v56 = vmul.f32 %v4183_v59, %v4183_v59  ;;  %3042 = vmatpush3.bf16.msra.mxu1 %v4179_v39  ;;  %2663 = vmatprep.mubr.f32.mxu0 %v3290_v31 }
 0x21d   :  { %v1190_v33 = vadd.f32 %v1189_v62, %v1175_v45  ;;  %2743 = vmatprep.mubr.f32.mxu1 %v3290_v31  ;;  %2664 = vmatmul.mubr.f32.gmra.mrb[60].mxu0 %v3288_v6  ;;  %v4193_v22 = vpack.c.bf16 %v3288_v6, %v3290_v31  ;;  %v4195_v1 = vmul.f32 0.5, %v1147_v34 }
 0x21e   :  { %v3292_v20 = vpop.eup %3291  ;;  %v4197_v0 = vmul.f32 0.5, %v1146_v49  ;;  %2744 = vmatmul.mubr.f32.gmra.mrb[60].mxu1 %v3288_v6 }
 0x21f   :  { %v1191_v5 = vadd.f32 %v1190_v33, %v1176_v56  ;;  %v3294_v4 = vpop.eup %3293  ;;  %1007 = vst [vmem:[#allocation6 + $0xf8] sm:$0xff] %v3292_v20  ;;  %v1149_v10 = vadd.f32 %v3292_v20, %v4084_v11  ;;  %3035 = vmatprep.subr.bf16.mxu1 %v4193_v22  ;;  %v1179_v11 = vmul.f32 %v4195_v1, %v4195_v1 }
 0x220   :  { %1006 = vst [vmem:[#allocation6 + $0xf0] sm:$0xff] %v3294_v4  ;;  %v1148_v18 = vadd.f32 %v3294_v4, %v4087_v17  ;;  %v1178_v28 = vmul.f32 %v4197_v0, %v4197_v0  ;;  %3043 = vmatpush3.bf16.msra.mxu1 %v4193_v22  ;;  %2666 = vmatprep.mubr.f32.mxu0 %v3294_v4 }
 0x221   :  { %v1192_v15 = vadd.f32 %v1191_v5, %v1177_v14  ;;  %2746 = vmatprep.mubr.f32.mxu1 %v3294_v4  ;;  %2667 = vmatmul.mubr.f32.gmra.mrb[62].mxu0 %v3292_v20  ;;  %v4207_v48 = vpack.c.bf16 %v3292_v20, %v3294_v4  ;;  %v1165_v47 = vmul.f32 0.5, %v1149_v10  ;;  %v1119_v10 = vmul.f32 %v3935_v50, %v3833_v41 }
 0x222   :  { %v1164_v24 = vmul.f32 0.5, %v1148_v18  ;;  %2747 = vmatmul.mubr.f32.gmra.mrb[62].mxu1 %v3292_v20  ;;  %v1118_v18 = vmul.f32 %v3935_v50, %v3836_v46 }
 0x223   :  { %v1193_v29 = vadd.f32 %v1192_v15, %v1178_v28  ;;  %3036 = vmatprep.subr.bf16.mxu1 %v4207_v48  ;;  %v1181_v30 = vmul.f32 %v1165_v47, %v1165_v47  ;;  %v1121_v15 = vmul.f32 %v3935_v50, %v3848_v43 }
 0x224   :  { %v1180_v17 = vmul.f32 %v1164_v24, %v1164_v24  ;;  %3044 = vmatpush3.bf16.msra.mxu1 %v4207_v48 }
 0x225   :  { %v1194_v23 = vadd.f32 %v1193_v29, %v1179_v11  ;;  %v1120_v11 = vmul.f32 %v3935_v50, %v3846_v57  ;;  %v1123_v29 = vmul.f32 %v3935_v50, %v3855_v2 }
 0x227   :  { %v1195_v58 = vadd.f32 %v1194_v23, %v1180_v17  ;;  %v1122_v17 = vmul.f32 %v3935_v50, %v3858_v8 }
 0x229   :  { %v1196_v35 = vadd.f32 %v1195_v58, %v1181_v30 }
 0x22b   :  { %v1197_v6 = vrot.slane %v1196_v35, 4 }
 0x22d   :  { %v1198_v45 = vadd.f32 %v1197_v6, %v1196_v35 }
 0x22f   :  { %v1199_v62 = vrot.slane %v1198_v45, 2 }
 0x231   :  { %v1200_v31 = vadd.f32 %v1199_v62, %v1198_v45 }
 0x233   :  { %v1201_v34 = vrot.slane %v1200_v31, 1 }
 0x235   :  { %v1202_v49 = vadd.f32 %v1201_v34, %v1200_v31 }
 0x237   :  { %3295 = vrsqrt.f32 %v1202_v49  ;;  %vm1205_vm3 = vcmp.eq.f32.partialorder %v1202_v49, inf  ;;  %v1208_v20 = vand.u32 2147483648, %v1202_v49  ;;  %vm1207_vm4 = vcmp.eq.f32.partialorder %v1202_v49, 0.0 }
 0x241   :  { %v3296_v56 = vpop.eup %3295 }
 0x242   :  { %v1204_v33 = vmul.f32 %v3296_v56, %v1202_v49 }
 0x244   :  { %v1206_v14 = vsel %vm1205_vm3, %v1202_v49, %v1204_v33  ;;  %v4292_v33 = vld [vmem:[%s4752_s8] ss:$0 sm:$0xff] }
 0x245   :  { %v1209_v5 = vsel %vm1207_vm4, %v1208_v20, %v1206_v14 }
 0x246   :  { %v1210_v4 = vmax.f32 %v1209_v5, 1e-12 }
 0x248   :  { %3297 = vrcp.f32 %v1210_v4 }
 0x252   :  { %v3298_v28 = vpop.eup %3297 }
 0x253   :  { %v1213_v23 = vmul.f32 %v3298_v28, %v4104_v3  ;;  %v1212_v41 = vmul.f32 %v3298_v28, %v4109_v7  ;;  %v1215_v30 = vmul.f32 %v3298_v28, %v4125_v9  ;;  %v1214_v46 = vmul.f32 %v3298_v28, %v4123_v52 }
 0x254   :  { %v1217_v58 = vmul.f32 %v3298_v28, %v4135_v27  ;;  %v1216_v43 = vmul.f32 %v3298_v28, %v4139_v32  ;;  %v1219_v57 = vmul.f32 %v3298_v28, %v4156_v12  ;;  %v1218_v35 = vmul.f32 %v3298_v28, %v4154_v63 }
 0x255   :  { %v4233_v2 = vadd.f32 %v1213_v23, %v1119_v10  ;;  %v4235_v6 = vadd.f32 %v1212_v41, %v1118_v18  ;;  %v4237_v8 = vadd.f32 %v1215_v30, %v1121_v15  ;;  %v4239_v50 = vadd.f32 %v1214_v46, %v1120_v11 }
 0x256   :  { %v4241_v3 = vadd.f32 %v1217_v58, %v1123_v29  ;;  %v4243_v7 = vadd.f32 %v1216_v43, %v1122_v17  ;;  %v4246_v52 = vadd.f32 %v1219_v57, %v3939_v51  ;;  %v4249_v9 = vadd.f32 %v1218_v35, %v3943_v16 }
 0x257   :  { %v1221_v27 = vmul.f32 %v3298_v28, %v4169_v21  ;;  %v1220_v32 = vmul.f32 %v3298_v28, %v4167_v42  ;;  %v1223_v63 = vmul.f32 %v3298_v28, %v4181_v44  ;;  %v1222_v12 = vmul.f32 %v3298_v28, %v4183_v59 }
 0x258   :  { %4768 = vst [vmem:[#allocation12_spill] sm:$0xff] %v4241_v3  ;;  %4769 = vst [vmem:[#allocation13_spill] sm:$0xff] %v4243_v7  ;;  %v1225_v45 = vmul.f32 %v3298_v28, %v4195_v1  ;;  %v1224_v62 = vmul.f32 %v3298_v28, %v4197_v0  ;;  %v1227_v31 = vmul.f32 %v3298_v28, %v1165_v47 }
 0x259   :  { %4770 = vst [vmem:[#allocation14_spill] sm:$0xff] %v4246_v52  ;;  %4771 = vst [vmem:[#allocation15_spill] sm:$0xff] %v4249_v9  ;;  %v1226_v34 = vmul.f32 %v3298_v28, %v1164_v24  ;;  %v4258_v51 = vadd.f32 %v1221_v27, %v3947_v13  ;;  %v4261_v16 = vadd.f32 %v1220_v32, %v3951_v53  ;;  %v4284_v53 = vld [vmem:[%s4750_s6] ss:$0 sm:$0xff]  ;;  %s3464_s6 = smov [#allocation6]  }
 0x25a   :  { %v4264_v21 = vadd.f32 %v1223_v63, %v3955_v54  ;;  %v4267_v42 = vadd.f32 %v1222_v12, %v3959_v61  ;;  %v4270_v44 = vadd.f32 %v1225_v45, %v3963_v25  ;;  %v4273_v59 = vadd.f32 %v1224_v62, %v3967_v38  ;;  %s2142_s8 = sshll.u32 %s3464_s6, 4  ;;  %s2143_s8 = int_to_ptr.vmem [resolvable:$true] %s2142_s8 }
 0x25b   :  { %4772 = vst [vmem:[#allocation16_spill] sm:$0xff] %v4258_v51  ;;  %4773 = vst [vmem:[#allocation17_spill] sm:$0xff] %v4261_v16  ;;  %v4276_v1 = vadd.f32 %v1227_v31, %v3970_v55  ;;  %v4279_v13 = vadd.f32 %v1226_v34, %v3973_v37  ;;  %s3389_s15 = scalar_lea.vmem %s2143_s8, 4096  ;;  %p3394_p9 = scmp.lt.s32.totalorder %s2143_s8, %s2143_s8 }
 0x25c   :  { %4774 = vst [vmem:[#allocation18_spill] sm:$0xff] %v4264_v21  ;;  %4775 = vst [vmem:[#allocation19_spill] sm:$0xff] %v4267_v42  ;;  %p3390_p8 = scmp.ne.s32.totalorder %s2143_s8, %s3389_s15  ;;  %p3395_p10 = scmp.lt.s32.totalorder %s3389_s15, %s3389_s15 }
 0x25d   :  { %4776 = vst [vmem:[#allocation20_spill] sm:$0xff] %v4270_v44  ;;  %4777 = vst [vmem:[#allocation21_spill] sm:$0xff] %v4273_v59 }
 0x25e   :  { %4778 = vst [vmem:[#allocation22_spill] sm:$0xff] %v4276_v1  ;;  %4779 = vst [vmem:[#allocation23_spill] sm:$0xff] %v4279_v13  ;;  %p3396_p11 = por %p3395_p10, %p3394_p9 }
 0x260   :  { %p3397_p12 = pnand %p3396_p11, %p3390_p8 }
 0x2b8   :  { %v2623_v54 = vpop.f32.mrb[32].mxu0  ;;  %v2703_v61 = vpop.f32.mrb[32].mxu1 }
 0x2b9   :  { %v823_v0 = vadd.f32 %v2623_v54, %v4284_v53  ;;  %v817_v25 = vpop.f32.mrb[33].mxu0  ;;  %v1333_v47 = vpop.f32.mrb[33].mxu1  ;;  %v4296_v4 = vadd.f32 %v2703_v61, %v4292_v33 }
 0x2ba   :  { %v818_v38 = vadd.f32 %v4284_v53, %v817_v25  ;;  %v4303_v11 = vadd.f32 %v4292_v33, %v1333_v47 }
 0x2bb   :  { %1009 = vst [vmem:[#allocation8 + $0x8] sm:$0xff] %v823_v0 }
 0x2bc   :  { %1008 = vst [vmem:[#allocation8] sm:$0xff] %v818_v38  ;;  %v2626_v55 = vpop.f32.mrb[34].mxu0  ;;  %v2706_v24 = vpop.f32.mrb[34].mxu1 }
 0x2bd   :  { %v833_v37 = vadd.f32 %v2626_v55, %v4284_v53  ;;  %v827_v49 = vpop.f32.mrb[35].mxu0  ;;  %v1343_v56 = vpop.f32.mrb[35].mxu1  ;;  %v4314_v58 = vadd.f32 %v2706_v24, %v4292_v33 }
 0x2be   :  { %v828_v20 = vadd.f32 %v4284_v53, %v827_v49  ;;  %v4321_v32 = vadd.f32 %v4292_v33, %v1343_v56 }
 0x2bf   :  { %1011 = vst [vmem:[#allocation8 + $0x18] sm:$0xff] %v833_v37 }
 0x2c0   :  { %1010 = vst [vmem:[#allocation8 + $0x10] sm:$0xff] %v828_v20  ;;  %v2629_v14 = vpop.f32.mrb[36].mxu0  ;;  %v2709_v5 = vpop.f32.mrb[36].mxu1 }
 0x2c1   :  { %v843_v10 = vadd.f32 %v2629_v14, %v4284_v53  ;;  %v4300_v18 = vadd.f32 %v2709_v5, %v4292_v33  ;;  %v837_v28 = vpop.f32.mrb[37].mxu0  ;;  %v1353_v15 = vpop.f32.mrb[37].mxu1 }
 0x2c2   :  { %v838_v29 = vadd.f32 %v4284_v53, %v837_v28  ;;  %v4307_v17 = vadd.f32 %v4292_v33, %v1353_v15 }
 0x2c3   :  { %1013 = vst [vmem:[#allocation8 + $0x28] sm:$0xff] %v843_v10  ;;  %v1493_v23 = vmax.f32 %v4296_v4, %v4300_v18 }
 0x2c4   :  { %1012 = vst [vmem:[#allocation8 + $0x20] sm:$0xff] %v838_v29  ;;  %v1492_v41 = vmax.f32 %v4303_v11, %v4307_v17  ;;  %v2632_v30 = vpop.f32.mrb[38].mxu0  ;;  %v2712_v46 = vpop.f32.mrb[38].mxu1 }
 0x2c5   :  { %v853_v43 = vadd.f32 %v2632_v30, %v4284_v53  ;;  %v4318_v57 = vadd.f32 %v2712_v46, %v4292_v33  ;;  %v847_v35 = vpop.f32.mrb[39].mxu0  ;;  %v1363_v27 = vpop.f32.mrb[39].mxu1 }
 0x2c6   :  { %v848_v63 = vadd.f32 %v4284_v53, %v847_v35  ;;  %v4325_v12 = vadd.f32 %v4292_v33, %v1363_v27 }
 0x2c7   :  { %1015 = vst [vmem:[#allocation8 + $0x38] sm:$0xff] %v853_v43  ;;  %v1495_v45 = vmax.f32 %v4314_v58, %v4318_v57 }
 0x2c8   :  { %1014 = vst [vmem:[#allocation8 + $0x30] sm:$0xff] %v848_v63  ;;  %v1494_v62 = vmax.f32 %v4321_v32, %v4325_v12  ;;  %v2635_v31 = vpop.f32.mrb[40].mxu0  ;;  %v2715_v34 = vpop.f32.mrb[40].mxu1 }
 0x2c9   :  { %v863_v54 = vadd.f32 %v2635_v31, %v4284_v53  ;;  %v4333_v61 = vadd.f32 %v2715_v34, %v4292_v33  ;;  %v857_v0 = vpop.f32.mrb[41].mxu0  ;;  %v1373_v25 = vpop.f32.mrb[41].mxu1 }
 0x2ca   :  { %v858_v47 = vadd.f32 %v4284_v53, %v857_v0  ;;  %v4337_v38 = vadd.f32 %v4292_v33, %v1373_v25 }
 0x2cb   :  { %1017 = vst [vmem:[#allocation8 + $0x48] sm:$0xff] %v863_v54  ;;  %v1497_v55 = vmax.f32 %v1493_v23, %v4333_v61 }
 0x2cc   :  { %1016 = vst [vmem:[#allocation8 + $0x40] sm:$0xff] %v858_v47  ;;  %v1496_v24 = vmax.f32 %v1492_v41, %v4337_v38  ;;  %v2638_v37 = vpop.f32.mrb[42].mxu0  ;;  %v2718_v49 = vpop.f32.mrb[42].mxu1 }
 0x2cd   :  { %v873_v56 = vadd.f32 %v2638_v37, %v4284_v53  ;;  %v4343_v20 = vadd.f32 %v2718_v49, %v4292_v33  ;;  %v867_v14 = vpop.f32.mrb[43].mxu0  ;;  %v1383_v5 = vpop.f32.mrb[43].mxu1 }
 0x2ce   :  { %v868_v10 = vadd.f32 %v4284_v53, %v867_v14  ;;  %v4347_v28 = vadd.f32 %v4292_v33, %v1383_v5 }
 0x2cf   :  { %1019 = vst [vmem:[#allocation8 + $0x58] sm:$0xff] %v873_v56  ;;  %v1499_v15 = vmax.f32 %v1495_v45, %v4343_v20 }
 0x2d0   :  { %1018 = vst [vmem:[#allocation8 + $0x50] sm:$0xff] %v868_v10  ;;  %v1498_v29 = vmax.f32 %v1494_v62, %v4347_v28  ;;  %v2641_v23 = vpop.f32.mrb[44].mxu0  ;;  %v2721_v41 = vpop.f32.mrb[44].mxu1 }
 0x2d1   :  { %v883_v30 = vadd.f32 %v2641_v23, %v4284_v53  ;;  %v4353_v46 = vadd.f32 %v2721_v41, %v4292_v33  ;;  %v877_v43 = vpop.f32.mrb[45].mxu0  ;;  %v1393_v35 = vpop.f32.mrb[45].mxu1 }
 0x2d2   :  { %v878_v27 = vadd.f32 %v4284_v53, %v877_v43  ;;  %v4357_v63 = vadd.f32 %v4292_v33, %v1393_v35 }
 0x2d3   :  { %1021 = vst [vmem:[#allocation8 + $0x68] sm:$0xff] %v883_v30  ;;  %v1501_v45 = vmax.f32 %v1497_v55, %v4353_v46 }
 0x2d4   :  { %1020 = vst [vmem:[#allocation8 + $0x60] sm:$0xff] %v878_v27  ;;  %v1500_v62 = vmax.f32 %v1496_v24, %v4357_v63  ;;  %v2644_v31 = vpop.f32.mrb[46].mxu0  ;;  %v2724_v34 = vpop.f32.mrb[46].mxu1 }
 0x2d5   :  { %v893_v54 = vadd.f32 %v2644_v31, %v4284_v53  ;;  %v4363_v0 = vadd.f32 %v2724_v34, %v4292_v33  ;;  %v887_v25 = vpop.f32.mrb[47].mxu0  ;;  %v1403_v47 = vpop.f32.mrb[47].mxu1 }
 0x2d6   :  { %v1504_v37 = vmax.f32 %v1500_v62, %v1501_v45  ;;  %v888_v49 = vadd.f32 %v4284_v53, %v887_v25  ;;  %v4367_v56 = vadd.f32 %v4292_v33, %v1403_v47 }
 0x2d7   :  { %1023 = vst [vmem:[#allocation8 + $0x78] sm:$0xff] %v893_v54  ;;  %v1503_v55 = vmax.f32 %v1499_v15, %v4363_v0 }
 0x2d8   :  { %1022 = vst [vmem:[#allocation8 + $0x70] sm:$0xff] %v888_v49  ;;  %v1502_v24 = vmax.f32 %v1498_v29, %v4367_v56  ;;  %v2647_v14 = vpop.f32.mrb[48].mxu0  ;;  %v2727_v5 = vpop.f32.mrb[48].mxu1 }
 0x2d9   :  { %v903_v10 = vadd.f32 %v2647_v14, %v4284_v53  ;;  %v897_v23 = vpop.f32.mrb[49].mxu0  ;;  %v1413_v41 = vpop.f32.mrb[49].mxu1  ;;  %v4376_v49 = vadd.f32 %v2727_v5, %v4292_v33 }
 0x2da   :  { %v1505_v30 = vmax.f32 %v1502_v24, %v1503_v55  ;;  %v898_v43 = vadd.f32 %v4284_v53, %v897_v23  ;;  %v4383_v23 = vadd.f32 %v4292_v33, %v1413_v41 }
 0x2db   :  { %1025 = vst [vmem:[#allocation8 + $0x88] sm:$0xff] %v903_v10 }
 0x2dc   :  { %v1506_v35 = vmax.f32 %v1504_v37, %v1505_v30  ;;  %1024 = vst [vmem:[#allocation8 + $0x80] sm:$0xff] %v898_v43  ;;  %v2650_v27 = vpop.f32.mrb[50].mxu0  ;;  %v2730_v45 = vpop.f32.mrb[50].mxu1 }
 0x2dd   :  { %v913_v62 = vadd.f32 %v2650_v27, %v4284_v53  ;;  %v907_v15 = vpop.f32.mrb[51].mxu0  ;;  %v1423_v31 = vpop.f32.mrb[51].mxu1 }
 0x2de   :  { %v1507_v34 = vrot.slane %v1506_v35, 4  ;;  %v908_v29 = vadd.f32 %v4284_v53, %v907_v15 }
 0x2df   :  { %1027 = vst [vmem:[#allocation8 + $0x98] sm:$0xff] %v913_v62 }
 0x2e0   :  { %v1508_v54 = vmax.f32 %v1506_v35, %v1507_v34  ;;  %1026 = vst [vmem:[#allocation8 + $0x90] sm:$0xff] %v908_v29  ;;  %v2653_v25 = vpop.f32.mrb[52].mxu0  ;;  %v2733_v47 = vpop.f32.mrb[52].mxu1  ;;  %v4394_v34 = vadd.f32 %v2730_v45, %v4292_v33 }
 0x2e1   :  { %v923_v37 = vadd.f32 %v2653_v25, %v4284_v53  ;;  %v4380_v55 = vadd.f32 %v2733_v47, %v4292_v33  ;;  %v917_v24 = vpop.f32.mrb[53].mxu0  ;;  %v1433_v14 = vpop.f32.mrb[53].mxu1 }
 0x2e2   :  { %v1509_v10 = vrot.slane %v1508_v54, 2  ;;  %v918_v30 = vadd.f32 %v4284_v53, %v917_v24  ;;  %v4387_v43 = vadd.f32 %v4292_v33, %v1433_v14  ;;  %v4401_v24 = vadd.f32 %v4292_v33, %v1423_v31 }
 0x2e3   :  { %1029 = vst [vmem:[#allocation8 + $0xa8] sm:$0xff] %v923_v37  ;;  %v1809_v5 = vmax.f32 %v4376_v49, %v4380_v55 }
 0x2e4   :  { %v1510_v35 = vmax.f32 %v1508_v54, %v1509_v10  ;;  %1028 = vst [vmem:[#allocation8 + $0xa0] sm:$0xff] %v918_v30  ;;  %v1808_v27 = vmax.f32 %v4383_v23, %v4387_v43  ;;  %v2656_v62 = vpop.f32.mrb[54].mxu0  ;;  %v2736_v15 = vpop.f32.mrb[54].mxu1 }
 0x2e5   :  { %v933_v41 = vadd.f32 %v2656_v62, %v4284_v53  ;;  %v4398_v29 = vadd.f32 %v2736_v15, %v4292_v33  ;;  %v927_v25 = vpop.f32.mrb[55].mxu0  ;;  %v1443_v47 = vpop.f32.mrb[55].mxu1 }
 0x2e6   :  { %v1511_v37 = vrot.slane %v1510_v35, 1  ;;  %v928_v54 = vadd.f32 %v4284_v53, %v927_v25  ;;  %v4405_v14 = vadd.f32 %v4292_v33, %v1443_v47 }
 0x2e7   :  { %1031 = vst [vmem:[#allocation8 + $0xb8] sm:$0xff] %v933_v41  ;;  %v1811_v45 = vmax.f32 %v4394_v34, %v4398_v29 }
 0x2e8   :  { %v4409_v10 = vmax.f32 %v1510_v35, %v1511_v37  ;;  %1030 = vst [vmem:[#allocation8 + $0xb0] sm:$0xff] %v928_v54  ;;  %v1810_v30 = vmax.f32 %v4401_v24, %v4405_v14  ;;  %v2659_v62 = vpop.f32.mrb[56].mxu0 }
 0x2e9   :  { %v943_v15 = vadd.f32 %v2659_v62, %v4284_v53  ;;  %v2739_v31 = vpop.f32.mrb[56].mxu1  ;;  %v937_v13 = vpop.f32.mrb[57].mxu0 }
 0x2ea   :  { %v4417_v47 = vadd.f32 %v2739_v31, %v4292_v33  ;;  %v938_v41 = vadd.f32 %v4284_v53, %v937_v13  ;;  %v1453_v1 = vpop.f32.mrb[57].mxu1  ;;  %v1513_v35 = vsub.f32 %v4303_v11, %v4409_v10  ;;  %v1514_v54 = vsub.f32 %v4296_v4, %v4409_v10 }
 0x2eb   :  { %1033 = vst [vmem:[#allocation8 + $0xc8] sm:$0xff] %v943_v15  ;;  %v4423_v37 = vadd.f32 %v4292_v33, %v1453_v1  ;;  %v1515_v62 = vsub.f32 %v4321_v32, %v4409_v10  ;;  %v1516_v31 = vsub.f32 %v4314_v58, %v4409_v10  ;;  %v1517_v11 = vsub.f32 %v4307_v17, %v4409_v10 }
 0x2ec   :  { %v1813_v25 = vmax.f32 %v1809_v5, %v4417_v47  ;;  %1032 = vst [vmem:[#allocation8 + $0xc0] sm:$0xff] %v938_v41  ;;  %v2662_v13 = vpop.f32.mrb[58].mxu0  ;;  %v1518_v1 = vsub.f32 %v4300_v18, %v4409_v10  ;;  %v1519_v32 = vsub.f32 %v4325_v12, %v4409_v10  ;;  %v1520_v58 = vsub.f32 %v4318_v57, %v4409_v10 }
 0x2ed   :  { %v1812_v15 = vmax.f32 %v1808_v27, %v4423_v37  ;;  %v953_v4 = vadd.f32 %v2662_v13, %v4284_v53  ;;  %v2742_v59 = vpop.f32.mrb[58].mxu1  ;;  %v947_v44 = vpop.f32.mrb[59].mxu0  ;;  %v1521_v18 = vsub.f32 %v4337_v38, %v4409_v10  ;;  %v1522_v13 = vsub.f32 %v4333_v61, %v4409_v10 }
 0x2ee   :  { %v4443_v5 = vadd.f32 %v2742_v59, %v4292_v33  ;;  %v948_v17 = vadd.f32 %v4284_v53, %v947_v44  ;;  %v1463_v41 = vpop.f32.mrb[59].mxu1  ;;  %v1523_v12 = vsub.f32 %v4347_v28, %v4409_v10  ;;  %v1529_v59 = vmul.f32 1.442695, %v1513_v35 }
 0x2ef   :  { %1035 = vst [vmem:[#allocation8 + $0xd8] sm:$0xff] %v953_v4  ;;  %v4449_v27 = vadd.f32 %v4292_v33, %v1463_v41  ;;  %v1531_v16 = vmul.f32 1.442695, %v1514_v54  ;;  %v1533_v51 = vmul.f32 1.442695, %v1515_v62 }
 0x2f0   :  { %v1815_v57 = vmax.f32 %v1811_v45, %v4443_v5  ;;  %1034 = vst [vmem:[#allocation8 + $0xd0] sm:$0xff] %v948_v17  ;;  %v2665_v44 = vpop.f32.mrb[60].mxu0  ;;  %3299 = vpow2.f32 %v1529_v59  ;;  %v1535_v41 = vmul.f32 1.442695, %v1516_v31  ;;  %v1537_v59 = vmul.f32 1.442695, %v1517_v11 }
 0x2f1   :  { %v1814_v61 = vmax.f32 %v1810_v30, %v4449_v27  ;;  %v963_v28 = vadd.f32 %v2665_v44, %v4284_v53  ;;  %v2745_v42 = vpop.f32.mrb[60].mxu1  ;;  %v957_v21 = vpop.f32.mrb[61].mxu0  ;;  %3301 = vpow2.f32 %v1531_v16  ;;  %v1539_v31 = vmul.f32 1.442695, %v1518_v1 }
 0x2f2   :  { %v4467_v45 = vadd.f32 %v2745_v42, %v4292_v33  ;;  %v958_v17 = vadd.f32 %v4284_v53, %v957_v21  ;;  %v1473_v38 = vpop.f32.mrb[61].mxu1  ;;  %3303 = vpow2.f32 %v1533_v51  ;;  %v1547_v1 = vmul.f32 1.442695, %v1522_v13 }
 0x2f3   :  { %1037 = vst [vmem:[#allocation8 + $0xe8] sm:$0xff] %v963_v28  ;;  %v4471_v4 = vadd.f32 %v4292_v33, %v1473_v38  ;;  %3305 = vpow2.f32 %v1535_v41  ;;  %v4781_v13 = vsub.f32 %v4357_v63, %v4409_v10 }
 0x2f4   :  { %v1817_v30 = vmax.f32 %v1813_v25, %v4467_v45  ;;  %1036 = vst [vmem:[#allocation8 + $0xe0] sm:$0xff] %v958_v17  ;;  %v2668_v44 = vpop.f32.mrb[62].mxu0  ;;  %3307 = vpow2.f32 %v1537_v59  ;;  %v1541_v17 = vmul.f32 1.442695, %v1519_v32 }
 0x2f5   :  { %v1816_v35 = vmax.f32 %v1812_v15, %v4471_v4  ;;  %v973_v42 = vadd.f32 %v2668_v44, %v4284_v53  ;;  %v2748_v54 = vpop.f32.mrb[62].mxu1  ;;  %v967_v9 = vpop.f32.mrb[63].mxu0  ;;  %3309 = vpow2.f32 %v1539_v31 }
 0x2f6   :  { %v4477_v21 = vadd.f32 %v2748_v54, %v4292_v33  ;;  %v968_v62 = vadd.f32 %v4284_v53, %v967_v9  ;;  %v1483_v38 = vpop.f32.mrb[63].mxu1  ;;  %v1543_v9 = vmul.f32 1.442695, %v1520_v58  ;;  %3311 = vpow2.f32 %v1541_v17 }
 0x2f7   :  { %v1820_v28 = vmax.f32 %v1816_v35, %v1817_v30  ;;  %1039 = vst [vmem:[#allocation8 + $0xf8] sm:$0xff] %v973_v42  ;;  %v4481_v25 = vadd.f32 %v4292_v33, %v1483_v38  ;;  %v1545_v33 = vmul.f32 1.442695, %v1521_v18  ;;  %v1549_v58 = vmul.f32 1.442695, %v1523_v12 }
 0x2f8   :  { %v1819_v16 = vmax.f32 %v1815_v57, %v4477_v21  ;;  %1038 = vst [vmem:[#allocation8 + $0xf0] sm:$0xff] %v968_v62  ;;  %3313 = vpow2.f32 %v1543_v9  ;;  %v4780_v18 = vsub.f32 %v4343_v20, %v4409_v10  ;;  %v4782_v12 = vsub.f32 %v4353_v46, %v4409_v10 }
 0x2f9   :  { %v1818_v15 = vmax.f32 %v1814_v61, %v4481_v25  ;;  %3315 = vpow2.f32 %v1545_v33  ;;  %v4783_v20 = vsub.f32 %v4367_v56, %v4409_v10  ;;  %v4784_v46 = vsub.f32 %v4363_v0, %v4409_v10 }
 0x2fa   :  { %v4485_v53 = vpop.eup %3299  ;;  %3317 = vpow2.f32 %v1547_v1  ;;  %v1551_v38 = vmul.f32 1.442695, %v4780_v18 }
 0x2fb   :  { %v1821_v44 = vmax.f32 %v1818_v15, %v1819_v16  ;;  %v4487_v11 = vpop.eup %3301  ;;  %3319 = vpow2.f32 %v1549_v58  ;;  %v1555_v15 = vmul.f32 1.442695, %v4782_v12  ;;  %v1557_v63 = vmul.f32 1.442695, %v4783_v20 }
 0x2fc   :  { %v1561_v57 = vadd.f32 %v4487_v11, %v4485_v53  ;;  %v4491_v41 = vpop.eup %3303  ;;  %3321 = vpow2.f32 %v1551_v38 }
 0x2fd   :  { %v1822_v51 = vmax.f32 %v1820_v28, %v1821_v44  ;;  %v4494_v35 = vpop.eup %3305  ;;  %v1553_v28 = vmul.f32 1.442695, %v4781_v13 }
 0x2fe   :  { %v1562_v32 = vadd.f32 %v4491_v41, %v1561_v57  ;;  %v4497_v62 = vpop.eup %3307  ;;  %v1559_v57 = vmul.f32 1.442695, %v4784_v46 }
 0x2ff   :  { %v1823_v30 = vrot.slane %v1822_v51, 4  ;;  %v4506_v31 = vpop.eup %3309  ;;  %3323 = vpow2.f32 %v1553_v28 }
 0x300   :  { %v1563_v54 = vadd.f32 %v4494_v35, %v1562_v32  ;;  %v4512_v9 = vpop.eup %3311  ;;  %3325 = vpow2.f32 %v1555_v15 }
 0x301   :  { %v1824_v61 = vmax.f32 %v1822_v51, %v1823_v30  ;;  %3327 = vpow2.f32 %v1557_v63 }
 0x302   :  { %v1564_v16 = vadd.f32 %v4497_v62, %v1563_v54  ;;  %v4520_v30 = vpop.eup %3313  ;;  %3329 = vpow2.f32 %v1559_v57 }
 0x303   :  { %v1825_v42 = vrot.slane %v1824_v61, 2  ;;  %v4532_v58 = vpop.eup %3315 }
 0x304   :  { %v1565_v44 = vadd.f32 %v4506_v31, %v1564_v16  ;;  %v4547_v38 = vpop.eup %3317 }
 0x305   :  { %v1826_v59 = vmax.f32 %v1824_v61, %v1825_v42  ;;  %v4562_v13 = vpop.eup %3319 }
 0x306   :  { %v1566_v33 = vadd.f32 %v4512_v9, %v1565_v44 }
 0x307   :  { %v1827_v17 = vrot.slane %v1826_v59, 1 }
 0x308   :  { %v1567_v61 = vadd.f32 %v4520_v30, %v1566_v33 }
 0x309   :  { %v4517_v51 = vmax.f32 %v1826_v59, %v1827_v17 }
 0x30b   :  { %v1843_v1 = vsub.f32 %v4481_v25, %v4517_v51  ;;  %v1829_v56 = vsub.f32 %v4383_v23, %v4517_v51  ;;  %v1830_v32 = vsub.f32 %v4376_v49, %v4517_v51  ;;  %v1831_v42 = vsub.f32 %v4401_v24, %v4517_v51 }
 0x30c   :  { %v1832_v0 = vsub.f32 %v4394_v34, %v4517_v51  ;;  %v1833_v10 = vsub.f32 %v4387_v43, %v4517_v51  ;;  %v1834_v54 = vsub.f32 %v4380_v55, %v4517_v51  ;;  %v1568_v23 = vadd.f32 %v4532_v58, %v1567_v61 }
 0x30d   :  { %v1835_v49 = vsub.f32 %v4405_v14, %v4517_v51  ;;  %v1836_v18 = vsub.f32 %v4398_v29, %v4517_v51  ;;  %v1837_v34 = vsub.f32 %v4423_v37, %v4517_v51  ;;  %v1838_v43 = vsub.f32 %v4417_v47, %v4517_v51 }
 0x30e   :  { %v1839_v55 = vsub.f32 %v4449_v27, %v4517_v51  ;;  %v1840_v24 = vsub.f32 %v4443_v5, %v4517_v51  ;;  %v1569_v59 = vadd.f32 %v4547_v38, %v1568_v23  ;;  %v1841_v14 = vsub.f32 %v4471_v4, %v4517_v51  ;;  %v4567_v5 = vpop.eup %3321 }
 0x30f   :  { %v1842_v29 = vsub.f32 %v4467_v45, %v4517_v51  ;;  %v1844_v47 = vsub.f32 %v4477_v21, %v4517_v51  ;;  %v1845_v37 = vmul.f32 1.442695, %v1829_v56  ;;  %v1847_v28 = vmul.f32 1.442695, %v1830_v32  ;;  %v4569_v12 = vpop.eup %3323 }
 0x310   :  { %v1570_v27 = vadd.f32 %v4562_v13, %v1569_v59  ;;  %v1849_v16 = vmul.f32 1.442695, %v1831_v42  ;;  %v1851_v45 = vmul.f32 1.442695, %v1832_v0  ;;  %v4572_v15 = vpop.eup %3325  ;;  %v1853_v44 = vmul.f32 1.442695, %v1833_v10 }
 0x311   :  { %3331 = vpow2.f32 %v1845_v37  ;;  %v4575_v20 = vpop.eup %3327  ;;  %v1855_v33 = vmul.f32 1.442695, %v1834_v54  ;;  %v1857_v57 = vmul.f32 1.442695, %v1835_v49  ;;  %v1859_v32 = vmul.f32 1.442695, %v1836_v18 }
 0x312   :  { %v1571_v4 = vadd.f32 %v4567_v5, %v1570_v27  ;;  %3333 = vpow2.f32 %v1847_v28  ;;  %v4579_v61 = vpop.eup %3329  ;;  %v1861_v23 = vmul.f32 1.442695, %v1837_v34  ;;  %v1863_v49 = vmul.f32 1.442695, %v1838_v43 }
 0x313   :  { %3335 = vpow2.f32 %v1849_v16  ;;  %v1865_v16 = vmul.f32 1.442695, %v1839_v55  ;;  %v1871_v55 = vmul.f32 1.442695, %v1842_v29 }
 0x314   :  { %v1572_v17 = vadd.f32 %v4569_v12, %v1571_v4  ;;  %3337 = vpow2.f32 %v1851_v45 }
 0x315   :  { %3339 = vpow2.f32 %v1853_v44  ;;  %v1869_v44 = vmul.f32 1.442695, %v1841_v14 }
 0x316   :  { %v1573_v63 = vadd.f32 %v4572_v15, %v1572_v17  ;;  %3341 = vpow2.f32 %v1855_v33  ;;  %v1867_v17 = vmul.f32 1.442695, %v1840_v24  ;;  %v1873_v24 = vmul.f32 1.442695, %v1843_v1 }
 0x317   :  { %3343 = vpow2.f32 %v1857_v57 }
 0x318   :  { %v1574_v46 = vadd.f32 %v4575_v20, %v1573_v63  ;;  %3345 = vpow2.f32 %v1859_v32 }
 0x319   :  { %3347 = vpow2.f32 %v1861_v23 }
 0x31a   :  { %v1575_v56 = vadd.f32 %v4579_v61, %v1574_v46  ;;  %3349 = vpow2.f32 %v1863_v49 }
 0x31b   :  { %v4582_v42 = vpop.eup %3331  ;;  %3351 = vpow2.f32 %v1865_v16 }
 0x31c   :  { %v4584_v0 = vpop.eup %3333  ;;  %v1576_v10 = vrot.slane %v1575_v56, 4  ;;  %3353 = vpow2.f32 %v1867_v17 }
 0x31d   :  { %v1877_v54 = vadd.f32 %v4584_v0, %v4582_v42  ;;  %v4588_v59 = vpop.eup %3335  ;;  %3355 = vpow2.f32 %v1869_v44 }
 0x31e   :  { %v1577_v37 = vadd.f32 %v1576_v10, %v1575_v56  ;;  %v4591_v27 = vpop.eup %3337 }
 0x31f   :  { %v1878_v28 = vadd.f32 %v4588_v59, %v1877_v54  ;;  %v4594_v45 = vpop.eup %3339  ;;  %v1875_v54 = vmul.f32 1.442695, %v1844_v47 }
 0x320   :  { %v1578_v18 = vrot.slane %v1577_v37, 2  ;;  %v4597_v33 = vpop.eup %3341 }
 0x321   :  { %v1879_v4 = vadd.f32 %v4591_v27, %v1878_v28  ;;  %v3344_v57 = vpop.eup %3343 }
 0x322   :  { %v1579_v34 = vadd.f32 %v1578_v18, %v1577_v37  ;;  %v3346_v10 = vpop.eup %3345 }
 0x323   :  { %v1880_v63 = vadd.f32 %v4594_v45, %v1879_v4  ;;  %v3348_v23 = vpop.eup %3347 }
 0x324   :  { %v1580_v43 = vrot.slane %v1579_v34, 1  ;;  %v3350_v49 = vpop.eup %3349 }
 0x325   :  { %v1881_v46 = vadd.f32 %v4597_v33, %v1880_v63  ;;  %v3352_v29 = vpop.eup %3351 }
 0x326   :  { %v1581_v56 = vadd.f32 %v1580_v43, %v1579_v34  ;;  %v3354_v16 = vpop.eup %3353 }
 0x327   :  { %v1882_v32 = vadd.f32 %v3344_v57, %v1881_v46  ;;  %v3356_v4 = vpop.eup %3355 }
 0x328   :  { %3357 = vrcp.f32 %v1581_v56 }
 0x329   :  { %v1883_v14 = vadd.f32 %v3346_v10, %v1882_v32  ;;  %3359 = vpow2.f32 %v1871_v55 }
 0x32a   :  { %3361 = vpow2.f32 %v1873_v24 }
 0x32b   :  { %v1884_v37 = vadd.f32 %v3348_v23, %v1883_v14  ;;  %3363 = vpow2.f32 %v1875_v54 }
 0x32d   :  { %v1885_v28 = vadd.f32 %v3350_v49, %v1884_v37 }
 0x32f   :  { %v1886_v18 = vadd.f32 %v3352_v29, %v1885_v28 }
 0x331   :  { %v1887_v34 = vadd.f32 %v3354_v16, %v1886_v18 }
 0x332   :  { %v3358_v25 = vpop.eup %3357 }
 0x333   :  { %v1583_v1 = vmul.f32 %v3358_v25, %v4485_v53  ;;  %v1888_v17 = vadd.f32 %v3356_v4, %v1887_v34  ;;  %v1584_v44 = vmul.f32 %v3358_v25, %v4487_v11  ;;  %v1585_v63 = vmul.f32 %v3358_v25, %v4491_v41  ;;  %v3360_v21 = vpop.eup %3359 }
 0x334   :  { %v1586_v51 = vmul.f32 %v3358_v25, %v4494_v35  ;;  %v1587_v47 = vmul.f32 %v3358_v25, %v4497_v62  ;;  %v1588_v43 = vmul.f32 %v3358_v25, %v4506_v31  ;;  %v1589_v46 = vmul.f32 %v3358_v25, %v4512_v9  ;;  %v3362_v24 = vpop.eup %3361 }
 0x335   :  { %v1889_v56 = vadd.f32 %v3360_v21, %v1888_v17  ;;  %v1590_v55 = vmul.f32 %v3358_v25, %v4520_v30  ;;  %v1591_v32 = vmul.f32 %v3358_v25, %v4532_v58  ;;  %v1592_v53 = vmul.f32 %v3358_v25, %v4547_v38  ;;  %v3364_v54 = vpop.eup %3363 }
 0x336   :  { %v1593_v11 = vmul.f32 %v3358_v25, %v4562_v13  ;;  %v1594_v41 = vmul.f32 %v3358_v25, %v4567_v5  ;;  %v1595_v35 = vmul.f32 %v3358_v25, %v4569_v12  ;;  %v1596_v62 = vmul.f32 %v3358_v25, %v4572_v15 }
 0x337   :  { %v1890_v14 = vadd.f32 %v3362_v24, %v1889_v56  ;;  %v1597_v31 = vmul.f32 %v3358_v25, %v4575_v20  ;;  %v1598_v9 = vmul.f32 %v3358_v25, %v4579_v61 }
 0x339   :  { %v1891_v30 = vadd.f32 %v3364_v54, %v1890_v14 }
 0x33b   :  { %v1892_v37 = vrot.slane %v1891_v30, 4 }
 0x33d   :  { %v1893_v58 = vadd.f32 %v1892_v37, %v1891_v30 }
 0x33f   :  { %v1894_v28 = vrot.slane %v1893_v58, 2 }
 0x341   :  { %v1895_v38 = vadd.f32 %v1894_v28, %v1893_v58 }
 0x343   :  { %v1896_v18 = vrot.slane %v1895_v38, 1 }
 0x345   :  { %v1897_v34 = vadd.f32 %v1896_v18, %v1895_v38 }
 0x347   :  { %3365 = vrcp.f32 %v1897_v34 }
 0x351   :  { %v3366_v13 = vpop.eup %3365 }
 0x352   :  { %v1899_v5 = vmul.f32 %v3366_v13, %v4582_v42  ;;  %v1900_v12 = vmul.f32 %v3366_v13, %v4584_v0  ;;  %v1901_v15 = vmul.f32 %v3366_v13, %v4588_v59  ;;  %v1902_v20 = vmul.f32 %v3366_v13, %v4591_v27 }
 0x353   :  { %v1903_v61 = vmul.f32 %v3366_v13, %v4594_v45  ;;  %v1904_v25 = vmul.f32 %v3366_v13, %v4597_v33  ;;  %v1905_v17 = vmul.f32 %v3366_v13, %v3344_v57  ;;  %v1906_v56 = vmul.f32 %v3366_v13, %v3346_v10 }
 0x354   :  { %v3051_v14 = vpack.i.bf16 %v1899_v5, %v1583_v1  ;;  %v3053_v30 = vpack.i.bf16 %v1900_v12, %v1584_v44  ;;  %v3055_v37 = vpack.i.bf16 %v1901_v15, %v1585_v63  ;;  %v3057_v58 = vpack.i.bf16 %v1902_v20, %v1586_v51 }
 0x355   :  { %v3059_v28 = vpack.i.bf16 %v1903_v61, %v1587_v47  ;;  %v3061_v38 = vpack.i.bf16 %v1904_v25, %v1588_v43  ;;  %v3063_v18 = vpack.i.bf16 %v1905_v17, %v1589_v46  ;;  %v3065_v42 = vpack.i.bf16 %v1906_v56, %v1590_v55 }
 0x356   :  { %3052 = vxpose.xlu0.b32.start [1/16] %v3051_v14, 128  ;;  %v1907_v0 = vmul.f32 %v3366_v13, %v3348_v23  ;;  %v1908_v34 = vmul.f32 %v3366_v13, %v3350_v49  ;;  %v1909_v59 = vmul.f32 %v3366_v13, %v3352_v29  ;;  %v1910_v52 = vmul.f32 %v3366_v13, %v3354_v16 }
 0x357   :  { %v1911_v27 = vmul.f32 %v3366_v13, %v3356_v4  ;;  %v1912_v7 = vmul.f32 %v3366_v13, %v3360_v21  ;;  %v1913_v45 = vmul.f32 %v3366_v13, %v3362_v24  ;;  %v1914_v3 = vmul.f32 %v3366_v13, %v3364_v54 }
 0x358   :  { %v3067_v33 = vpack.i.bf16 %v1907_v0, %v1591_v32  ;;  %v3069_v57 = vpack.i.bf16 %v1908_v34, %v1592_v53  ;;  %v3071_v10 = vpack.i.bf16 %v1909_v59, %v1593_v11  ;;  %v3073_v1 = vpack.i.bf16 %v1910_v52, %v1594_v41 }
 0x359   :  { %v3075_v44 = vpack.i.bf16 %v1911_v27, %v1595_v35  ;;  %v3077_v63 = vpack.i.bf16 %v1912_v7, %v1596_v62  ;;  %v3079_v51 = vpack.i.bf16 %v1913_v45, %v1597_v31  ;;  %v3081_v47 = vpack.i.bf16 %v1914_v3, %v1598_v9 }
 0x35a   :  { %3054 = vxpose.xlu0.b32.cont [2/16] %v3053_v30, 128 }
 0x35e   :  { %3056 = vxpose.xlu0.b32.cont [3/16] %v3055_v37, 128 }
 0x362   :  { %3058 = vxpose.xlu0.b32.cont [4/16] %v3057_v58, 128 }
 0x366   :  { %3060 = vxpose.xlu0.b32.cont [5/16] %v3059_v28, 128 }
 0x36a   :  { %3062 = vxpose.xlu0.b32.cont [6/16] %v3061_v38, 128 }
 0x36e   :  { %3064 = vxpose.xlu0.b32.cont [7/16] %v3063_v18, 128 }
 0x372   :  { %3066 = vxpose.xlu0.b32.cont [8/16] %v3065_v42, 128 }
 0x376   :  { %3068 = vxpose.xlu0.b32.cont [9/16] %v3067_v33, 128 }
 0x37a   :  { %3070 = vxpose.xlu0.b32.cont [10/16] %v3069_v57, 128 }
 0x37e   :  { %3072 = vxpose.xlu0.b32.cont [11/16] %v3071_v10, 128 }
 0x382   :  { %3074 = vxpose.xlu0.b32.cont [12/16] %v3073_v1, 128 }
 0x386   :  { %3076 = vxpose.xlu0.b32.cont [13/16] %v3075_v44, 128 }
 0x38a   :  { %3078 = vxpose.xlu0.b32.cont [14/16] %v3077_v63, 128 }
 0x38e   :  { %3080 = vxpose.xlu0.b32.cont [15/16] %v3079_v51, 128 }
 0x392   :  { %3082 = vxpose.xlu0.b32.end [16/16] %v3081_v47, 128 }
 0x3d6   :  { %v4628_v52 = vpop.trf.xlu0 }
 0x3d7   :  { %v3084_v7 = vunpack.i.l.bf16 %v4628_v52  ;;  %v3087_v58 = vunpack.i.h.bf16 %v4628_v52 }
 0x3d9   :  { %2781 = vmatprep.mubr.f32.mxu0 %v3084_v7 }
 0x3da   :  { %v4631_v3 = vpop.trf.xlu0 }
 0x3db   :  { %v3089_v23 = vunpack.i.l.bf16 %v4631_v3  ;;  %v3092_v28 = vunpack.i.h.bf16 %v4631_v3 }
 0x3dd   :  { %2782 = vmatmul.mubr.f32.vlgmr.msra.gmra.mrb[64].mxu0 %v3089_v23 }
 0x3de   :  { %3000 = vmatpush3.bf16.msra.mxu0 %v4101_v36  ;;  %v4635_v49 = vpop.trf.xlu0 }
 0x3df   :  { %3002 = vmatprep.subr.bf16.mxu0 %v4116_v40  ;;  %v3094_v29 = vunpack.i.l.bf16 %v4635_v49  ;;  %v3097_v38 = vunpack.i.h.bf16 %v4635_v49 }
 0x3e1   :  { %2784 = vmatprep.mubr.f32.mxu0 %v3094_v29 }
 0x3e2   :  { %3004 = vmatpush3.bf16.msra.mxu0 %v4116_v40  ;;  %v4640_v16 = vpop.trf.xlu0 }
 0x3e3   :  { %3006 = vmatprep.subr.bf16.mxu0 %v4130_v26  ;;  %v3099_v4 = vunpack.i.l.bf16 %v4640_v16  ;;  %v3102_v18 = vunpack.i.h.bf16 %v4640_v16 }
 0x3e5   :  { %2785 = vmatmul.mubr.f32.gmra.mrb[66].mxu0 %v3099_v4 }
 0x3e6   :  { %3008 = vmatpush3.bf16.msra.mxu0 %v4130_v26  ;;  %v4645_v21 = vpop.trf.xlu0 }
 0x3e7   :  { %3010 = vmatprep.subr.bf16.mxu0 %v4151_v60  ;;  %v3104_v36 = vunpack.i.l.bf16 %v4645_v21  ;;  %v3107_v42 = vunpack.i.h.bf16 %v4645_v21 }
 0x3e9   :  { %2787 = vmatprep.mubr.f32.mxu0 %v3104_v36 }
 0x3ea   :  { %3012 = vmatpush3.bf16.msra.mxu0 %v4151_v60  ;;  %v4650_v43 = vpop.trf.xlu0 }
 0x3eb   :  { %3014 = vmatprep.subr.bf16.mxu0 %v4165_v19  ;;  %v3109_v40 = vunpack.i.l.bf16 %v4650_v43  ;;  %v3112_v0 = vunpack.i.h.bf16 %v4650_v43 }
 0x3ed   :  { %2788 = vmatmul.mubr.f32.gmra.mrb[68].mxu0 %v3109_v40 }
 0x3ee   :  { %3016 = vmatpush3.bf16.msra.mxu0 %v4165_v19  ;;  %v3113_v46 = vpop.trf.xlu0 }
 0x3ef   :  { %3018 = vmatprep.subr.bf16.mxu0 %v4179_v39  ;;  %v3114_v26 = vunpack.i.l.bf16 %v3113_v46  ;;  %v3117_v55 = vunpack.i.h.bf16 %v3113_v46 }
 0x3f1   :  { %2790 = vmatprep.mubr.f32.mxu0 %v3114_v26  ;;  %2846 = vmatprep.mubr.f32.mxu1 %v3117_v55 }
 0x3f2   :  { %3020 = vmatpush3.bf16.msra.mxu0 %v4179_v39  ;;  %v3118_v32 = vpop.trf.xlu0 }
 0x3f3   :  { %v3122_v60 = vunpack.i.h.bf16 %v3118_v32  ;;  %3022 = vmatprep.subr.bf16.mxu0 %v4193_v22  ;;  %v3119_v53 = vunpack.i.l.bf16 %v3118_v32 }
 0x3f5   :  { %2791 = vmatmul.mubr.f32.gmra.mrb[70].mxu0 %v3119_v53  ;;  %2847 = vmatmul.mubr.f32.vlgmr.msra.gmra.mrb[64].mxu1 %v3122_v60 }
 0x3f6   :  { %3024 = vmatpush3.bf16.msra.mxu0 %v4193_v22  ;;  %v3123_v24 = vpop.trf.xlu0 }
 0x3f7   :  { %3026 = vmatprep.subr.bf16.mxu0 %v4207_v48  ;;  %v3124_v19 = vunpack.i.l.bf16 %v3123_v24  ;;  %v3127_v11 = vunpack.i.h.bf16 %v3123_v24 }
 0x3f9   :  { %2793 = vmatprep.mubr.f32.mxu0 %v3124_v19  ;;  %2849 = vmatprep.mubr.f32.mxu1 %v3127_v11 }
 0x3fa   :  { %3028 = vmatpush3.bf16.msra.mxu0 %v4207_v48  ;;  %v3128_v41 = vpop.trf.xlu0 }
 0x3fb   :  { %v3129_v39 = vunpack.i.l.bf16 %v3128_v41  ;;  %v3132_v35 = vunpack.i.h.bf16 %v3128_v41 }
 0x3fd   :  { %2794 = vmatmul.mubr.f32.gmra.mrb[72].mxu0 %v3129_v39  ;;  %2850 = vmatmul.mubr.f32.gmra.mrb[66].mxu1 %v3132_v35 }
 0x3fe   :  { %v3133_v62 = vpop.trf.xlu0 }
 0x3ff   :  { %v3134_v31 = vunpack.i.l.bf16 %v3133_v62  ;;  %v3137_v9 = vunpack.i.h.bf16 %v3133_v62 }
 0x401   :  { %2796 = vmatprep.mubr.f32.mxu0 %v3134_v31  ;;  %2852 = vmatprep.mubr.f32.mxu1 %v3137_v9 }
 0x402   :  { %v3138_v22 = vpop.trf.xlu0 }
 0x403   :  { %v3139_v54 = vunpack.i.l.bf16 %v3138_v22  ;;  %v3142_v13 = vunpack.i.h.bf16 %v3138_v22 }
 0x405   :  { %2797 = vmatmul.mubr.f32.gmra.mrb[74].mxu0 %v3139_v54  ;;  %2853 = vmatmul.mubr.f32.gmra.mrb[68].mxu1 %v3142_v13 }
 0x406   :  { %v3143_v5 = vpop.trf.xlu0 }
 0x407   :  { %v3144_v12 = vunpack.i.l.bf16 %v3143_v5  ;;  %v3147_v15 = vunpack.i.h.bf16 %v3143_v5 }
 0x409   :  { %2799 = vmatprep.mubr.f32.mxu0 %v3144_v12  ;;  %2855 = vmatprep.mubr.f32.mxu1 %v3147_v15 }
 0x40a   :  { %v3148_v48 = vpop.trf.xlu0 }
 0x40b   :  { %v3149_v20 = vunpack.i.l.bf16 %v3148_v48  ;;  %v3152_v61 = vunpack.i.h.bf16 %v3148_v48 }
 0x40d   :  { %2800 = vmatmul.mubr.f32.gmra.mrb[76].mxu0 %v3149_v20  ;;  %2856 = vmatmul.mubr.f32.gmra.mrb[70].mxu1 %v3152_v61 }
 0x40e   :  { %v3153_v25 = vpop.trf.xlu0 }
 0x40f   :  { %v3154_v17 = vunpack.i.l.bf16 %v3153_v25  ;;  %v3157_v56 = vunpack.i.h.bf16 %v3153_v25 }
 0x411   :  { %2802 = vmatprep.mubr.f32.mxu0 %v3154_v17  ;;  %2858 = vmatprep.mubr.f32.mxu1 %v3157_v56 }
 0x412   :  { %v3158_v14 = vpop.trf.xlu0 }
 0x413   :  { %v3162_v30 = vunpack.i.h.bf16 %v3158_v14  ;;  %v3159_v37 = vunpack.i.l.bf16 %v3158_v14 }
 0x415   :  { %2803 = vmatmul.mubr.f32.gmra.mrb[78].mxu0 %v3159_v37  ;;  %2859 = vmatmul.mubr.f32.gmra.mrb[72].mxu1 %v3162_v30 }
 0x416   :  { %2837 = vmatprep.mubr.f32.mxu0 %v3087_v58 }
 0x419   :  { %2838 = vmatmul.mubr.f32.vlgmr.msra.gmra.mrb[80].mxu0 %v3092_v28 }
 0x41a   :  { %2840 = vmatprep.mubr.f32.mxu0 %v3097_v38 }
 0x41d   :  { %2841 = vmatmul.mubr.f32.gmra.mrb[82].mxu0 %v3102_v18 }
 0x41e   :  { %2843 = vmatprep.mubr.f32.mxu0 %v3107_v42 }
 0x421   :  { %2844 = vmatmul.mubr.f32.gmra.mrb[84].mxu0 %v3112_v0 }
 0x422   :  { %3400 = shalt.err (!%p3397_p12)
}
 0x423   :  { %s3401_s17 = scalar_lea.hbm %s4754_s10, 4096 }
 0x424   :  { %p3402_p13 = scmp.ne.s32.totalorder %s4754_s10, %s3401_s17  ;;  %p3405_p0 = scmp.lt.u32.totalorder %s3401_s17, %s4754_s10 }
 0x426   :  { %p3407_p1 = pnand %p3405_p0, %p3402_p13 }
 0x428   :  { %3410 = shalt.err (!%p3407_p1)
}
 0x429   :  { %2148 = dma.vmem_to_hbm [thread:$0]  %s2143_s8, 4096, %s4754_s10, [#allocation7], %s3462_s27, %s3462_s27, %s3463_s28  }
 0x42a   :  { %s3465_s23 = smov [#allocation8]  }
 0x42b   :  { %s2154_s24 = sshll.u32 %s3465_s23, 4  ;;  %s2155_s24 = int_to_ptr.vmem [resolvable:$true] %s2154_s24 }
 0x42c   :  { %s3411_s3 = scalar_lea.vmem %s2155_s24, 4096  ;;  %p3416_p3 = scmp.lt.s32.totalorder %s2155_s24, %s2155_s24 }
 0x42d   :  { %p3412_p2 = scmp.ne.s32.totalorder %s2155_s24, %s3411_s3  ;;  %p3417_p4 = scmp.lt.s32.totalorder %s3411_s3, %s3411_s3 }
 0x42f   :  { %p3418_p5 = por %p3417_p4, %p3416_p3 }
 0x431   :  { %p3419_p6 = pnand %p3418_p5, %p3412_p2 }
 0x433   :  { %3422 = shalt.err (!%p3419_p6)
}
 0x434   :  { %s3423_s26 = scalar_lea.hbm %s4755_s11, 4096 }
 0x435   :  { %p3424_p7 = scmp.ne.s32.totalorder %s4755_s11, %s3423_s26  ;;  %p3427_p8 = scmp.lt.u32.totalorder %s3423_s26, %s4755_s11 }
 0x437   :  { %p3429_p9 = pnand %p3427_p8, %p3424_p7 }
 0x439   :  { %3432 = shalt.err (!%p3429_p9)
}
 0x43a   :  { %2160 = dma.vmem_to_hbm [thread:$0]  %s2155_s24, 4096, %s4755_s11, [#allocation7], %s3462_s27, %s3462_s27, %s3463_s28   ;;  %v4785_v63 = vld [vmem:[#allocation12_spill] sm:$0xff]  ;;  %v4786_v52 = vld [vmem:[#allocation13_spill] sm:$0xff]  ;;  %v4787_v49 = vld [vmem:[#allocation14_spill] sm:$0xff] }
 0x43b   :  { %v4788_v36 = vld [vmem:[#allocation15_spill] sm:$0xff]  ;;  %v4789_v55 = vld [vmem:[#allocation16_spill] sm:$0xff]  ;;  %v4790_v19 = vld [vmem:[#allocation17_spill] sm:$0xff]  ;;  %s3466_s11 = smov [#allocation5]  }
 0x43c   :  { %v4791_v62 = vld [vmem:[#allocation18_spill] sm:$0xff]  ;;  %v4792_v13 = vld [vmem:[#allocation19_spill] sm:$0xff]  ;;  %v4793_v20 = vld [vmem:[#allocation20_spill] sm:$0xff]  ;;  %s2130_s0 = sshll.u32 %s3466_s11, 4  ;;  %s2131_s0 = int_to_ptr.vmem [resolvable:$true] %s2130_s0 }
 0x43d   :  { %v4794_v14 = vld [vmem:[#allocation21_spill] sm:$0xff]  ;;  %v4795_v38 = vld [vmem:[#allocation22_spill] sm:$0xff]  ;;  %s3433_s13 = scalar_lea.vmem %s2131_s0, 4096  ;;  %p3438_p11 = scmp.lt.s32.totalorder %s2131_s0, %s2131_s0 }
 0x43e   :  { %p3434_p10 = scmp.ne.s32.totalorder %s2131_s0, %s3433_s13  ;;  %p3439_p12 = scmp.lt.s32.totalorder %s3433_s13, %s3433_s13 }
 0x440   :  { %p3440_p13 = por %p3439_p12, %p3438_p11 }
 0x442   :  { %p3441_p0 = pnand %p3440_p13, %p3434_p10 }
 0x4b0   :  { %v2783_v34 = vpop.f32.mrb[64].mxu0 }
 0x4b1   :  { %v1777_v59 = vadd.f32 %v2783_v34, %v4233_v2  ;;  %v1697_v27 = vpop.f32.mrb[65].mxu0 }
 0x4b2   :  { %v1776_v45 = vadd.f32 %v1697_v27, %v4235_v6 }
 0x4b3   :  { %1793 = vst [vmem:[#allocation5 + $0x8] sm:$0xff] %v1777_v59  ;;  %v4796_v59 = vld [vmem:[#allocation23_spill] sm:$0xff] }
 0x4b4   :  { %1792 = vst [vmem:[#allocation5] sm:$0xff] %v1776_v45 }
 0x4b8   :  { %v2786_v33 = vpop.f32.mrb[66].mxu0 }
 0x4b9   :  { %v1779_v57 = vadd.f32 %v2786_v33, %v4237_v8  ;;  %v1707_v10 = vpop.f32.mrb[67].mxu0 }
 0x4ba   :  { %v1778_v1 = vadd.f32 %v1707_v10, %v4239_v50 }
 0x4bb   :  { %1795 = vst [vmem:[#allocation5 + $0x18] sm:$0xff] %v1779_v57 }
 0x4bc   :  { %1794 = vst [vmem:[#allocation5 + $0x10] sm:$0xff] %v1778_v1 }
 0x4c0   :  { %v2789_v44 = vpop.f32.mrb[68].mxu0 }
 0x4c1   :  { %v1781_v51 = vadd.f32 %v2789_v44, %v4785_v63  ;;  %v1717_v47 = vpop.f32.mrb[69].mxu0 }
 0x4c2   :  { %v1780_v7 = vadd.f32 %v1717_v47, %v4786_v52 }
 0x4c3   :  { %1797 = vst [vmem:[#allocation5 + $0x28] sm:$0xff] %v1781_v51 }
 0x4c4   :  { %1796 = vst [vmem:[#allocation5 + $0x20] sm:$0xff] %v1780_v7 }
 0x4c8   :  { %v2792_v3 = vpop.f32.mrb[70].mxu0  ;;  %v2848_v23 = vpop.f32.mrb[64].mxu1 }
 0x4c9   :  { %v1783_v29 = vadd.f32 %v2792_v3, %v4787_v49  ;;  %v2099_v16 = vadd.f32 %v2848_v23, %v4787_v49  ;;  %v1727_v4 = vpop.f32.mrb[71].mxu0  ;;  %v2043_v21 = vpop.f32.mrb[65].mxu1 }
 0x4ca   :  { %v1782_v43 = vadd.f32 %v1727_v4, %v4788_v36  ;;  %v2098_v40 = vadd.f32 %v2043_v21, %v4788_v36 }
 0x4cb   :  { %1799 = vst [vmem:[#allocation5 + $0x38] sm:$0xff] %v1783_v29  ;;  %2116 = vst [vmem:[#allocation5 + $0xb8] sm:$0xff] %v2099_v16 }
 0x4cc   :  { %1798 = vst [vmem:[#allocation5 + $0x30] sm:$0xff] %v1782_v43  ;;  %2115 = vst [vmem:[#allocation5 + $0xb0] sm:$0xff] %v2098_v40 }
 0x4d0   :  { %v2795_v46 = vpop.f32.mrb[72].mxu0  ;;  %v2851_v26 = vpop.f32.mrb[66].mxu1 }
 0x4d1   :  { %v1785_v32 = vadd.f32 %v2795_v46, %v4789_v55  ;;  %v2101_v60 = vadd.f32 %v2851_v26, %v4789_v55  ;;  %v1737_v53 = vpop.f32.mrb[73].mxu0  ;;  %v2053_v24 = vpop.f32.mrb[67].mxu1 }
 0x4d2   :  { %v1784_v11 = vadd.f32 %v1737_v53, %v4790_v19  ;;  %v2100_v41 = vadd.f32 %v2053_v24, %v4790_v19 }
 0x4d3   :  { %1801 = vst [vmem:[#allocation5 + $0x48] sm:$0xff] %v1785_v32  ;;  %2118 = vst [vmem:[#allocation5 + $0xc8] sm:$0xff] %v2101_v60 }
 0x4d4   :  { %1800 = vst [vmem:[#allocation5 + $0x40] sm:$0xff] %v1784_v11  ;;  %2117 = vst [vmem:[#allocation5 + $0xc0] sm:$0xff] %v2100_v41 }
 0x4d8   :  { %v2798_v39 = vpop.f32.mrb[74].mxu0  ;;  %v2854_v35 = vpop.f32.mrb[68].mxu1 }
 0x4d9   :  { %v1787_v31 = vadd.f32 %v2798_v39, %v4791_v62  ;;  %v2103_v9 = vadd.f32 %v2854_v35, %v4791_v62  ;;  %v1747_v22 = vpop.f32.mrb[75].mxu0  ;;  %v2063_v54 = vpop.f32.mrb[69].mxu1 }
 0x4da   :  { %v1786_v5 = vadd.f32 %v1747_v22, %v4792_v13  ;;  %v2102_v12 = vadd.f32 %v2063_v54, %v4792_v13 }
 0x4db   :  { %1803 = vst [vmem:[#allocation5 + $0x58] sm:$0xff] %v1787_v31  ;;  %2120 = vst [vmem:[#allocation5 + $0xd8] sm:$0xff] %v2103_v9 }
 0x4dc   :  { %1802 = vst [vmem:[#allocation5 + $0x50] sm:$0xff] %v1786_v5  ;;  %2119 = vst [vmem:[#allocation5 + $0xd0] sm:$0xff] %v2102_v12 }
 0x4e0   :  { %v2801_v15 = vpop.f32.mrb[76].mxu0  ;;  %v2857_v48 = vpop.f32.mrb[70].mxu1 }
 0x4e1   :  { %v1789_v61 = vadd.f32 %v2801_v15, %v4793_v20  ;;  %v2105_v25 = vadd.f32 %v2857_v48, %v4793_v20  ;;  %v1757_v17 = vpop.f32.mrb[77].mxu0  ;;  %v2073_v56 = vpop.f32.mrb[71].mxu1 }
 0x4e2   :  { %v1788_v30 = vadd.f32 %v1757_v17, %v4794_v14  ;;  %v2104_v37 = vadd.f32 %v2073_v56, %v4794_v14 }
 0x4e3   :  { %1805 = vst [vmem:[#allocation5 + $0x68] sm:$0xff] %v1789_v61  ;;  %2122 = vst [vmem:[#allocation5 + $0xe8] sm:$0xff] %v2105_v25 }
 0x4e4   :  { %1804 = vst [vmem:[#allocation5 + $0x60] sm:$0xff] %v1788_v30  ;;  %2121 = vst [vmem:[#allocation5 + $0xe0] sm:$0xff] %v2104_v37 }
 0x4e8   :  { %v2804_v58 = vpop.f32.mrb[78].mxu0  ;;  %v2860_v28 = vpop.f32.mrb[72].mxu1 }
 0x4e9   :  { %v1791_v18 = vadd.f32 %v2804_v58, %v4795_v38  ;;  %v2107_v42 = vadd.f32 %v2860_v28, %v4795_v38  ;;  %v1767_v0 = vpop.f32.mrb[79].mxu0  ;;  %v2083_v34 = vpop.f32.mrb[73].mxu1 }
 0x4ea   :  { %v1790_v27 = vadd.f32 %v1767_v0, %v4796_v59  ;;  %v2106_v45 = vadd.f32 %v2083_v34, %v4796_v59 }
 0x4eb   :  { %1807 = vst [vmem:[#allocation5 + $0x78] sm:$0xff] %v1791_v18  ;;  %2124 = vst [vmem:[#allocation5 + $0xf8] sm:$0xff] %v2107_v42 }
 0x4ec   :  { %1806 = vst [vmem:[#allocation5 + $0x70] sm:$0xff] %v1790_v27  ;;  %2123 = vst [vmem:[#allocation5 + $0xf0] sm:$0xff] %v2106_v45  ;;  %v2839_v33 = vpop.f32.mrb[80].mxu0 }
 0x4ed   :  { %v2093_v57 = vadd.f32 %v2839_v33, %v4233_v2  ;;  %v2013_v10 = vpop.f32.mrb[81].mxu0 }
 0x4ee   :  { %v2092_v1 = vadd.f32 %v2013_v10, %v4235_v6 }
 0x4ef   :  { %2110 = vst [vmem:[#allocation5 + $0x88] sm:$0xff] %v2093_v57 }
 0x4f0   :  { %2109 = vst [vmem:[#allocation5 + $0x80] sm:$0xff] %v2092_v1  ;;  %v2842_v44 = vpop.f32.mrb[82].mxu0 }
 0x4f1   :  { %v2095_v51 = vadd.f32 %v2842_v44, %v4237_v8  ;;  %v2023_v47 = vpop.f32.mrb[83].mxu0 }
 0x4f2   :  { %v2094_v7 = vadd.f32 %v2023_v47, %v4239_v50 }
 0x4f3   :  { %2112 = vst [vmem:[#allocation5 + $0x98] sm:$0xff] %v2095_v51 }
 0x4f4   :  { %2111 = vst [vmem:[#allocation5 + $0x90] sm:$0xff] %v2094_v7  ;;  %v2845_v3 = vpop.f32.mrb[84].mxu0 }
 0x4f5   :  { %v2097_v23 = vadd.f32 %v2845_v3, %v4785_v63  ;;  %v2033_v49 = vpop.f32.mrb[85].mxu0 }
 0x4f6   :  { %v2096_v2 = vadd.f32 %v2033_v49, %v4786_v52 }
 0x4f7   :  { %2114 = vst [vmem:[#allocation5 + $0xa8] sm:$0xff] %v2097_v23 }
 0x4f8   :  { %2113 = vst [vmem:[#allocation5 + $0xa0] sm:$0xff] %v2096_v2 }
 0x4f9   :  { %3444 = shalt.err (!%p3441_p0)
}
 0x4fa   :  { %s3445_s8 = scalar_lea.hbm %s4753_s9, 4096 }
 0x4fb   :  { %p3446_p1 = scmp.ne.s32.totalorder %s4753_s9, %s3445_s8  ;;  %p3449_p2 = scmp.lt.u32.totalorder %s3445_s8, %s4753_s9 }
 0x4fd   :  { %p3451_p3 = pnand %p3449_p2, %p3446_p1 }
 0x4ff   :  { %3454 = shalt.err (!%p3451_p3)
}
 0x500   :  { %2136 = dma.vmem_to_hbm [thread:$0]  %s2131_s0, 4096, %s4753_s9, [#allocation4], %s3462_s27, %s3462_s27, %s3463_s28  }
 0x501   :  { %3457 = dma.done.wait [#allocation4], 4096  }
 0x502   :  { %3458 = vsyncadd [#allocation4], 4294963200 }
 0x503   :  { %3459 = dma.done.wait [#allocation7], 8192  }
 0x504   :  { %3460 = vsyncadd [#allocation7], 4294959104 }
 0x505   :  { %2170 = vsyncpa [#allocation3], 1 }
 0x506   :  { %2171 = vsyncpa [#allocation4], 1 }
 0x507   :  { %2172 = vsyncpa [#allocation7], 1 }

</bundles_post_ra>
